<compile_context>
chip_gen: v5e
topology: v5e:2x2
jax: 0.10.0
libtpu: 0.0.40
codegen_flags: <defaults>
</compile_context>

<pallas_src>
import math

import jax
import jax.numpy as jnp
from jax import lax
from jax.experimental import pallas as pl
from jax.experimental.pallas import tpu as pltpu

# ---------------- configuration ----------------
B = 2            # batch
L = 8            # args.seq_len
D = 32           # args.d_model
H = 4            # args.head
DK = D // H      # per-head dim
N_LAYERS = 2     # args.layer
D_FF = 4 * D     # PoswiseFeedForwardNet hidden (= 128)
VOCAB = 64       # vocab_size
VOCAB_PAD = 128  # lane-dense padding of the vocab axis
N_MASK = 4       # masked positions per sequence
BL = B * L       # flattened tokens
BM = B * N_MASK  # flattened masked positions

# ---- packed-slab layout (static offsets, all multiples of 8 sublanes) ----
WIDE_PER_LAYER = D + D + 8                 # wqkv(32) | w1(32) | b1(8)       -> 72 rows, 128 lanes
WIDE_ROWS = N_LAYERS * WIDE_PER_LAYER      # 144

NARROW_TOK = 0                             # tok_embed padded to (128, 32)
NARROW_PE = VOCAB_PAD                      # pe tiled over batch (16, 32)
NARROW_LAYER0 = VOCAB_PAD + BL             # 144
NARROW_PER_LAYER = D + D_FF + 8            # wo(32) | w2(128) | b2(8)        -> 168 rows, 32 lanes
NARROW_LIN_W = NARROW_LAYER0 + N_LAYERS * NARROW_PER_LAYER   # 480
NARROW_LIN_B = NARROW_LIN_W + D                              # 512
NARROW_ROWS = NARROW_LIN_B + 8                                # 520


# ---------------- math helpers (pure jnp/lax; usable in & out of Pallas) ----------------
def _erf(x):
    # TODO(synk): lax.erf has no Mosaic lowering; Abramowitz&Stegun 7.1.26 polynomial
    # (|err| <= 1.5e-7) built from exp/mul/add is float32-exact to ~1 ulp.
    a1, a2, a3, a4, a5 = 0.254829592, -0.284496736, 1.421413741, -1.453152027, 1.061405429
    p = 0.3275911
    s = jnp.where(x < 0.0, -1.0, 1.0)
    ax = jnp.abs(x)
    t = 1.0 / (1.0 + p * ax)
    poly = ((((a5 * t + a4) * t + a3) * t + a2) * t + a1) * t
    return s * (1.0 - poly * jnp.exp(-ax * ax))


def _gelu(x):
    # x * 0.5 * (1 + erf(x / sqrt(2)))  -- exact (erf-based) GELU from the module.
    return x * 0.5 * (1.0 + _erf(x * (1.0 / math.sqrt(2.0))))


def _layernorm(x, eps=1e-5):
    # nn.LayerNorm(d_model) with default weight=1, bias=0 (fresh/default-init modules in the
    # reference code).  TODO(synk): learned gamma/beta would need two extra (1,D) params.
    n = x.shape[-1]
    inv_n = 1.0 / n
    s1 = jnp.sum(x, axis=-1, keepdims=True)          # independent XLU reductions
    s2 = jnp.sum(x * x, axis=-1, keepdims=True)
    mu = s1 * inv_n
    var = s2 * inv_n - mu * mu
    return (x - mu) * lax.rsqrt(var + eps)


# ---------------- single fused Pallas kernel ----------------
def bert_fused_kernel(idx_ref, amask_ref, wide_ref, narrow_ref, o_ref):
    f32 = jnp.float32

    ids = idx_ref[0:BL, :]                # (BL, 1) int32 flattened token ids
    mpos = idx_ref[BL:BL + BM, :]         # (BM, 1) int32 global masked-position row ids

    # ---- Embedding: one-hot token gather on the MXU + sinusoidal PE + LayerNorm ----
    tok_embed = narrow_ref[NARROW_TOK:NARROW_TOK + VOCAB_PAD, :]      # (128, D), rows >=64 zero
    pe = narrow_ref[NARROW_PE:NARROW_PE + BL, :]                      # (BL, D)
    vocab_iota = lax.broadcasted_iota(jnp.int32, (BL, VOCAB_PAD), 1)
    onehot = (ids == vocab_iota).astype(f32)                          # (BL, 128)
    x = jnp.dot(onehot, tok_embed, preferred_element_type=f32) + pe
    x = _layernorm(x)                                                 # (BL, D)

    # ---- additive attention mask (hoisted; per head/layer loop only adds it) ----
    # -1e9 where key is a pad token (masked_fill_ semantics) OR cross-batch; exp underflows
    # to exactly 0 either way.
    amask = amask_ref[...]                                            # (BL, BL) f32
    scale = 1.0 / math.sqrt(DK)

    for l in range(N_LAYERS):                                         # static layer loop
        woff = l * WIDE_PER_LAYER
        wqkv = wide_ref[woff:woff + D, :]                             # (D, 128) [wq|wk|wv|0]
        w1 = wide_ref[woff + D:woff + 2 * D, :]                       # (D, D_FF)
        b1 = wide_ref[woff + 2 * D:woff + 2 * D + 1, :]               # (1, D_FF)
        noff = NARROW_LAYER0 + l * NARROW_PER_LAYER
        wo = narrow_ref[noff:noff + D, :]                             # (D, D)
        w2 = narrow_ref[noff + D:noff + D + D_FF, :]                  # (D_FF, D)
        b2 = narrow_ref[noff + D + D_FF:noff + D + D_FF + 1, :]       # (1, D)

        # fused QKV: one MXU push per layer
        qkv = jnp.dot(x, wqkv, preferred_element_type=f32)            # (BL, 128)

        attn_out = None
        for h in range(H):                                            # static head loop
            lo = h * DK
            qh = qkv[:, lo:lo + DK]                                   # (BL, DK)
            kh = qkv[:, D + lo:D + lo + DK]
            vh = qkv[:, 2 * D + lo:2 * D + lo + DK]
            # scores = (q k^T)/sqrt(dk) + mask ; K-transpose folded into the dot
            s = lax.dot_general(qh, kh, (((1,), (1,)), ((), ())),
                                preferred_element_type=f32) * scale + amask
            s = s - jnp.max(s, axis=-1, keepdims=True)
            e = jnp.exp(s)
            denom = jnp.sum(e, axis=-1, keepdims=True)
            # defer normalization past the MXU; exact f32 division for parity with torch softmax
            ctx = jnp.dot(e, vh, preferred_element_type=f32) * (1.0 / denom)   # (BL, DK)
            # fold the head straight into the output projection (no ctx scratch / concat)
            part = jnp.dot(ctx, wo[lo:lo + DK, :], preferred_element_type=f32)  # (BL, D)
            attn_out = part if attn_out is None else attn_out + part

        y = _layernorm(attn_out + x)                                  # residual + LN
        # PoswiseFeedForwardNet: fc2(gelu(fc1(y))), no residual / LN (matches PyTorch code)
        hdn = _gelu(jnp.dot(y, w1, preferred_element_type=f32) + b1)
        x = jnp.dot(hdn, w2, preferred_element_type=f32) + b2

    # ---- masked-position gather (torch.gather) as a one-hot matmul ----
    row_iota = lax.broadcasted_iota(jnp.int32, (BM, BL), 1)
    gsel = (mpos == row_iota).astype(f32)                             # (BM, BL)
    h_masked = jnp.dot(gsel, x, preferred_element_type=f32)           # (BM, D)

    # ---- LM head: gelu(linear(h_masked)) @ tok_embed.T (tied weights, no bias) ----
    lin_w = narrow_ref[NARROW_LIN_W:NARROW_LIN_W + D, :]
    lin_b = narrow_ref[NARROW_LIN_B:NARROW_LIN_B + 1, :]
    g = _gelu(jnp.dot(h_masked, lin_w, preferred_element_type=f32) + lin_b)
    # transposed contraction against the padded embedding -> lane-dense (BM, 128) store
    o_ref[...] = lax.dot_general(g, tok_embed, (((1,), (1,)), ((), ())),
                                 preferred_element_type=f32)


# ---------------- wrapper ----------------
def _vmem_spec():
    return pl.BlockSpec(memory_space=pltpu.MemorySpace.VMEM)


def _bert_forward_impl(wide, narrow, input_ids, masked_pos):
    ids_flat = input_ids.reshape(BL).astype(jnp.int32)
    mpos_flat = (masked_pos.astype(jnp.int32)
                 + (jnp.arange(B, dtype=jnp.int32) * L)[:, None]).reshape(BM)
    idx_slab = jnp.concatenate([ids_flat, mpos_flat]).reshape(BL + BM, 1)

    # combined additive mask: pad keys (masked_fill_(-1e9)) OR cross-batch (flattened layout)
    batch_id = jnp.arange(BL, dtype=jnp.int32) // L
    cross = batch_id[:, None] != batch_id[None, :]
    pad_key = (ids_flat == 0)[None, :]
    amask = jnp.where(cross | pad_key, -1.0e9, 0.0).astype(jnp.float32)   # (BL, BL)

    logits_pad = pl.pallas_call(
        bert_fused_kernel,
        out_shape=jax.ShapeDtypeStruct((BM, VOCAB_PAD), jnp.float32),
        in_specs=[_vmem_spec()] * 4,
        out_specs=_vmem_spec(),
        # Footprint ~150 KiB: far below default scoped VMEM on v5e/v6e/v7x; single TC, no grid.
    )(idx_slab, amask, wide, narrow)
    return logits_pad[:, :VOCAB].reshape(B, N_MASK, VOCAB)


bert_forward = jax.jit(_bert_forward_impl)


# ---------------- parameter init & one-time packing ----------------
def sinusoidal_pe(max_len, d_model):
    position = jnp.arange(max_len, dtype=jnp.float32)[:, None]
    div_term = jnp.exp(jnp.arange(0, d_model, 2, dtype=jnp.float32)
                       * -(math.log(10000.0) / d_model))
    pe = jnp.zeros((max_len, d_model), jnp.float32)
    pe = pe.at[:, 0::2].set(jnp.sin(position * div_term))
    pe = pe.at[:, 1::2].set(jnp.cos(position * div_term))
    return pe


def init_params(key):
    keys = iter(jax.random.split(key, 1 + N_LAYERS * 8 + 2))

    def lin(k, out_dim, in_dim):
        # torch Linear stores (out, in); transpose to (in, out) so kernels compute x @ W
        return (jax.random.normal(k, (out_dim, in_dim), jnp.float32) * 0.05).T

    tok_embed = jax.random.normal(next(keys), (VOCAB, D), jnp.float32) * 0.05

    acc = {"wq": [], "wk": [], "wv": [], "wo": [], "w1": [], "b1": [], "w2": [], "b2": []}
    for _ in range(N_LAYERS):
        acc["wq"].append(lin(next(keys), D, D))
        acc["wk"].append(lin(next(keys), D, D))
        acc["wv"].append(lin(next(keys), D, D))
        acc["wo"].append(lin(next(keys), D, D))
        acc["w1"].append(lin(next(keys), D_FF, D))
        acc["b1"].append(jax.random.normal(next(keys), (1, D_FF), jnp.float32) * 0.05)
        acc["w2"].append(lin(next(keys), D, D_FF))
        acc["b2"].append(jax.random.normal(next(keys), (1, D), jnp.float32) * 0.05)

    params = {"tok_embed": tok_embed, "pe": sinusoidal_pe(L, D)}
    for name, vals in acc.items():
        params[name] = jnp.stack(vals, axis=0)                        # (N_LAYERS, ...)
    params["lin_w"] = lin(next(keys), D, D)                            # self.linear
    params["lin_b"] = jax.random.normal(next(keys), (1, D), jnp.float32) * 0.05
    return params


def pack_params(p):
    """Pack all weights into two contiguous slabs (done once, outside jit)."""
    zpad = jnp.zeros((D, VOCAB_PAD - 3 * D), jnp.float32)
    wide_rows = []
    for l in range(N_LAYERS):
        wqkv = jnp.concatenate([p["wq"][l], p["wk"][l], p["wv"][l], zpad], axis=1)  # (32,128)
        wide_rows += [wqkv, p["w1"][l], jnp.pad(p["b1"][l], ((0, 7), (0, 0)))]
    wide = jnp.concatenate(wide_rows, axis=0)                          # (144, 128)

    narrow_rows = [jnp.pad(p["tok_embed"], ((0, VOCAB_PAD - VOCAB), (0, 0))),   # (128, 32)
                   jnp.tile(p["pe"], (B, 1))]                                   # (16, 32)
    for l in range(N_LAYERS):
        narrow_rows += [p["wo"][l], p["w2"][l], jnp.pad(p["b2"][l], ((0, 7), (0, 0)))]
    narrow_rows += [p["lin_w"], jnp.pad(p["lin_b"], ((0, 7), (0, 0)))]
    narrow = jnp.concatenate(narrow_rows, axis=0)                      # (520, 32)

    assert wide.shape == (WIDE_ROWS, VOCAB_PAD)
    assert narrow.shape == (NARROW_ROWS, D)
    return wide, narrow


# ---------------- pure-JAX reference (mirrors the PyTorch forward) ----------------
def bert_reference(params, input_ids, masked_pos):
    x = params["tok_embed"][input_ids] + params["pe"][None, :, :]      # (B, L, D)
    x = _layernorm(x)
    pad_key = (input_ids == 0)[:, None, None, :]                       # (B,1,1,L), key axis
    scale = 1.0 / math.sqrt(DK)
    for l in range(N_LAYERS):
        q = x @ params["wq"][l]
        k = x @ params["wk"][l]
        v = x @ params["wv"][l]
        qh = q.reshape(B, L, H, DK).transpose(0, 2, 1, 3)
        kh = k.reshape(B, L, H, DK).transpose(0, 2, 1, 3)
        vh = v.reshape(B, L, H, DK).transpose(0, 2, 1, 3)
        s = jnp.einsum("bhqd,bhkd->bhqk", qh, kh) * scale
        s = jnp.where(pad_key, -1.0e9, s)                              # masked_fill_
        a = jax.nn.softmax(s, axis=-1)
        ctx = jnp.einsum("bhqk,bhkd->bhqd", a, vh)
        ctx = ctx.transpose(0, 2, 1, 3).reshape(B, L, D)
        y = _layernorm(ctx @ params["wo"][l] + x)
        x = _gelu(y @ params["w1"][l] + params["b1"][l]) @ params["w2"][l] + params["b2"][l]
    hm = x[jnp.arange(B)[:, None], masked_pos]                         # (B, N_MASK, D)
    g = _gelu(hm @ params["lin_w"] + params["lin_b"])
    return g @ params["tok_embed"].T                                   # (B, N_MASK, VOCAB)


if __name__ == "__main__":
    root = jax.random.PRNGKey(0)
    k_param, k_ids = jax.random.split(root)

    params = init_params(k_param)
    wide, narrow = pack_params(params)

    input_ids = jax.random.randint(k_ids, (B, L), 1, VOCAB, dtype=jnp.int32)
    input_ids = input_ids.at[1, L - 1].set(0)          # a padding token to exercise the mask
    masked_pos = jnp.array([[1, 3, 5, 7], [0, 2, 4, 6]], dtype=jnp.int32)

    logits = bert_forward(wide, narrow, input_ids, masked_pos)
    jax.block_until_ready(logits)
    assert logits.shape == (B, N_MASK, VOCAB)
    assert bool(jnp.all(jnp.isfinite(logits)))

    ref = bert_reference(params, input_ids, masked_pos)
    assert bool(jnp.allclose(logits, ref, atol=2e-3, rtol=2e-3)), \
        float(jnp.max(jnp.abs(logits - ref)))

    print("KERNEL_OK")
</pallas_src>

<mosaic_0001>
module attributes {stable_mosaic.version = 11 : i64} {
  func.func @bert_fused_kernel(%arg0: memref<24x1xi32, #tpu.memory_space<vmem>>, %arg1: memref<16x16xf32, #tpu.memory_space<vmem>>, %arg2: memref<144x128xf32, #tpu.memory_space<vmem>>, %arg3: memref<520x32xf32, #tpu.memory_space<vmem>>, %arg4: memref<8x128xf32, #tpu.memory_space<vmem>>) attributes {dimension_semantics = [], scalar_prefetch = 0 : i64, scratch_operands = 0 : i64, tpu.core_type = #tpu.core_type<tc>} {
    %c0 = arith.constant 0 : index
    %c0_0 = arith.constant 0 : index
    %0 = vector.load %arg0[%c0, %c0_0] : memref<24x1xi32, #tpu.memory_space<vmem>>, vector<16x1xi32>
    %c16 = arith.constant 16 : index
    %c0_1 = arith.constant 0 : index
    %1 = vector.load %arg0[%c16, %c0_1] : memref<24x1xi32, #tpu.memory_space<vmem>>, vector<8x1xi32>
    %c0_2 = arith.constant 0 : index
    %c0_3 = arith.constant 0 : index
    %2 = vector.load %arg3[%c0_2, %c0_3] : memref<520x32xf32, #tpu.memory_space<vmem>>, vector<128x32xf32>
    %c128 = arith.constant 128 : index
    %c0_4 = arith.constant 0 : index
    %3 = vector.load %arg3[%c128, %c0_4] : memref<520x32xf32, #tpu.memory_space<vmem>>, vector<16x32xf32>
    %4 = tpu.iota {dimensions = array<i32: 1>} : vector<16x128xi32>
    %5 = vector.broadcast %0 : vector<16x1xi32> to vector<16x128xi32>
    %6 = arith.cmpi eq, %5, %4 : vector<16x128xi32>
    %7 = arith.extui %6 : vector<16x128xi1> to vector<16x128xi32>
    %8 = arith.sitofp %7 : vector<16x128xi32> to vector<16x128xf32>
    %cst = arith.constant dense<0.000000e+00> : vector<16x32xf32>
    %9 = tpu.matmul %8, %2, %cst {dimension_numbers = #tpu.dot_dimension_numbers<[1], [0], [0], [1], [0, 0, 1, 1], [], []>} : vector<16x128xf32>, vector<128x32xf32>, vector<16x32xf32> -> vector<16x32xf32>
    %10 = arith.addf %9, %3 : vector<16x32xf32>
    %cst_5 = arith.constant dense<0.000000e+00> : vector<16xf32>
    %11 = vector.multi_reduction <add>, %10, %cst_5 [1] : vector<16x32xf32> to vector<16xf32>
    %12 = vector.shape_cast %11 : vector<16xf32> to vector<16x1xf32>
    %13 = arith.mulf %10, %10 : vector<16x32xf32>
    %cst_6 = arith.constant dense<0.000000e+00> : vector<16xf32>
    %14 = vector.multi_reduction <add>, %13, %cst_6 [1] : vector<16x32xf32> to vector<16xf32>
    %15 = vector.shape_cast %14 : vector<16xf32> to vector<16x1xf32>
    %cst_7 = arith.constant 3.125000e-02 : f32
    %16 = vector.broadcast %cst_7 : f32 to vector<16x1xf32>
    %17 = arith.mulf %12, %16 : vector<16x1xf32>
    %cst_8 = arith.constant 3.125000e-02 : f32
    %18 = vector.broadcast %cst_8 : f32 to vector<16x1xf32>
    %19 = arith.mulf %15, %18 : vector<16x1xf32>
    %20 = arith.mulf %17, %17 : vector<16x1xf32>
    %21 = arith.subf %19, %20 : vector<16x1xf32>
    %22 = vector.broadcast %17 : vector<16x1xf32> to vector<16x32xf32>
    %23 = arith.subf %10, %22 : vector<16x32xf32>
    %cst_9 = arith.constant 9.99999974E-6 : f32
    %24 = vector.broadcast %cst_9 : f32 to vector<16x1xf32>
    %25 = arith.addf %21, %24 : vector<16x1xf32>
    %26 = math.rsqrt %25 : vector<16x1xf32>
    %27 = vector.broadcast %26 : vector<16x1xf32> to vector<16x32xf32>
    %28 = arith.mulf %23, %27 : vector<16x32xf32>
    %c0_10 = arith.constant 0 : index
    %c0_11 = arith.constant 0 : index
    %29 = vector.load %arg1[%c0_10, %c0_11] : memref<16x16xf32, #tpu.memory_space<vmem>>, vector<16x16xf32>
    %c0_12 = arith.constant 0 : index
    %c0_13 = arith.constant 0 : index
    %30 = vector.load %arg2[%c0_12, %c0_13] : memref<144x128xf32, #tpu.memory_space<vmem>>, vector<32x128xf32>
    %c32 = arith.constant 32 : index
    %c0_14 = arith.constant 0 : index
    %31 = vector.load %arg2[%c32, %c0_14] : memref<144x128xf32, #tpu.memory_space<vmem>>, vector<32x128xf32>
    %c64 = arith.constant 64 : index
    %c0_15 = arith.constant 0 : index
    %32 = vector.load %arg2[%c64, %c0_15] : memref<144x128xf32, #tpu.memory_space<vmem>>, vector<1x128xf32>
    %c144 = arith.constant 144 : index
    %c0_16 = arith.constant 0 : index
    %33 = vector.load %arg3[%c144, %c0_16] : memref<520x32xf32, #tpu.memory_space<vmem>>, vector<32x32xf32>
    %c176 = arith.constant 176 : index
    %c0_17 = arith.constant 0 : index
    %34 = vector.load %arg3[%c176, %c0_17] : memref<520x32xf32, #tpu.memory_space<vmem>>, vector<128x32xf32>
    %c304 = arith.constant 304 : index
    %c0_18 = arith.constant 0 : index
    %35 = vector.load %arg3[%c304, %c0_18] : memref<520x32xf32, #tpu.memory_space<vmem>>, vector<1x32xf32>
    %cst_19 = arith.constant dense<0.000000e+00> : vector<16x128xf32>
    %36 = tpu.matmul %28, %30, %cst_19 {dimension_numbers = #tpu.dot_dimension_numbers<[1], [0], [0], [1], [0, 0, 1, 1], [], []>} : vector<16x32xf32>, vector<32x128xf32>, vector<16x128xf32> -> vector<16x128xf32>
    %37 = vector.extract_strided_slice %36 {offsets = [0, 0], sizes = [16, 8], strides = [1, 1]} : vector<16x128xf32> to vector<16x8xf32>
    %38 = vector.extract_strided_slice %36 {offsets = [0, 32], sizes = [16, 8], strides = [1, 1]} : vector<16x128xf32> to vector<16x8xf32>
    %39 = vector.extract_strided_slice %36 {offsets = [0, 64], sizes = [16, 8], strides = [1, 1]} : vector<16x128xf32> to vector<16x8xf32>
    %cst_20 = arith.constant dense<0.000000e+00> : vector<16x16xf32>
    %40 = tpu.matmul %37, %38, %cst_20 {dimension_numbers = #tpu.dot_dimension_numbers<[1], [1], [0], [0], [0, 0, 1, 0], [], []>} : vector<16x8xf32>, vector<16x8xf32>, vector<16x16xf32> -> vector<16x16xf32>
    %cst_21 = arith.constant 0.353553385 : f32
    %41 = vector.broadcast %cst_21 : f32 to vector<16x16xf32>
    %42 = arith.mulf %40, %41 : vector<16x16xf32>
    %43 = arith.addf %42, %29 : vector<16x16xf32>
    %cst_22 = arith.constant dense<0xFF800000> : vector<16xf32>
    %44 = vector.multi_reduction <maximumf>, %43, %cst_22 [1] : vector<16x16xf32> to vector<16xf32>
    %45 = vector.shape_cast %44 : vector<16xf32> to vector<16x1xf32>
    %46 = vector.broadcast %45 : vector<16x1xf32> to vector<16x16xf32>
    %47 = arith.subf %43, %46 : vector<16x16xf32>
    %48 = math.exp %47 : vector<16x16xf32>
    %cst_23 = arith.constant dense<0.000000e+00> : vector<16xf32>
    %49 = vector.multi_reduction <add>, %48, %cst_23 [1] : vector<16x16xf32> to vector<16xf32>
    %50 = vector.shape_cast %49 : vector<16xf32> to vector<16x1xf32>
    %cst_24 = arith.constant dense<0.000000e+00> : vector<16x8xf32>
    %51 = tpu.matmul %48, %39, %cst_24 {dimension_numbers = #tpu.dot_dimension_numbers<[1], [0], [0], [1], [0, 0, 1, 1], [], []>} : vector<16x16xf32>, vector<16x8xf32>, vector<16x8xf32> -> vector<16x8xf32>
    %cst_25 = arith.constant 1.000000e+00 : f32
    %52 = vector.broadcast %cst_25 : f32 to vector<16x1xf32>
    %53 = arith.divf %52, %50 : vector<16x1xf32>
    %54 = vector.broadcast %53 : vector<16x1xf32> to vector<16x8xf32>
    %55 = arith.mulf %51, %54 : vector<16x8xf32>
    %56 = vector.extract_strided_slice %33 {offsets = [0, 0], sizes = [8, 32], strides = [1, 1]} : vector<32x32xf32> to vector<8x32xf32>
    %cst_26 = arith.constant dense<0.000000e+00> : vector<16x32xf32>
    %57 = tpu.matmul %55, %56, %cst_26 {dimension_numbers = #tpu.dot_dimension_numbers<[1], [0], [0], [1], [0, 0, 1, 1], [], []>} : vector<16x8xf32>, vector<8x32xf32>, vector<16x32xf32> -> vector<16x32xf32>
    %58 = vector.extract_strided_slice %36 {offsets = [0, 8], sizes = [16, 8], strides = [1, 1]} : vector<16x128xf32> to vector<16x8xf32>
    %59 = vector.extract_strided_slice %36 {offsets = [0, 40], sizes = [16, 8], strides = [1, 1]} : vector<16x128xf32> to vector<16x8xf32>
    %60 = vector.extract_strided_slice %36 {offsets = [0, 72], sizes = [16, 8], strides = [1, 1]} : vector<16x128xf32> to vector<16x8xf32>
    %cst_27 = arith.constant dense<0.000000e+00> : vector<16x16xf32>
    %61 = tpu.matmul %58, %59, %cst_27 {dimension_numbers = #tpu.dot_dimension_numbers<[1], [1], [0], [0], [0, 0, 1, 0], [], []>} : vector<16x8xf32>, vector<16x8xf32>, vector<16x16xf32> -> vector<16x16xf32>
    %cst_28 = arith.constant 0.353553385 : f32
    %62 = vector.broadcast %cst_28 : f32 to vector<16x16xf32>
    %63 = arith.mulf %61, %62 : vector<16x16xf32>
    %64 = arith.addf %63, %29 : vector<16x16xf32>
    %cst_29 = arith.constant dense<0xFF800000> : vector<16xf32>
    %65 = vector.multi_reduction <maximumf>, %64, %cst_29 [1] : vector<16x16xf32> to vector<16xf32>
    %66 = vector.shape_cast %65 : vector<16xf32> to vector<16x1xf32>
    %67 = vector.broadcast %66 : vector<16x1xf32> to vector<16x16xf32>
    %68 = arith.subf %64, %67 : vector<16x16xf32>
    %69 = math.exp %68 : vector<16x16xf32>
    %cst_30 = arith.constant dense<0.000000e+00> : vector<16xf32>
    %70 = vector.multi_reduction <add>, %69, %cst_30 [1] : vector<16x16xf32> to vector<16xf32>
    %71 = vector.shape_cast %70 : vector<16xf32> to vector<16x1xf32>
    %cst_31 = arith.constant dense<0.000000e+00> : vector<16x8xf32>
    %72 = tpu.matmul %69, %60, %cst_31 {dimension_numbers = #tpu.dot_dimension_numbers<[1], [0], [0], [1], [0, 0, 1, 1], [], []>} : vector<16x16xf32>, vector<16x8xf32>, vector<16x8xf32> -> vector<16x8xf32>
    %cst_32 = arith.constant 1.000000e+00 : f32
    %73 = vector.broadcast %cst_32 : f32 to vector<16x1xf32>
    %74 = arith.divf %73, %71 : vector<16x1xf32>
    %75 = vector.broadcast %74 : vector<16x1xf32> to vector<16x8xf32>
    %76 = arith.mulf %72, %75 : vector<16x8xf32>
    %77 = vector.extract_strided_slice %33 {offsets = [8, 0], sizes = [8, 32], strides = [1, 1]} : vector<32x32xf32> to vector<8x32xf32>
    %cst_33 = arith.constant dense<0.000000e+00> : vector<16x32xf32>
    %78 = tpu.matmul %76, %77, %cst_33 {dimension_numbers = #tpu.dot_dimension_numbers<[1], [0], [0], [1], [0, 0, 1, 1], [], []>} : vector<16x8xf32>, vector<8x32xf32>, vector<16x32xf32> -> vector<16x32xf32>
    %79 = arith.addf %57, %78 : vector<16x32xf32>
    %80 = vector.extract_strided_slice %36 {offsets = [0, 16], sizes = [16, 8], strides = [1, 1]} : vector<16x128xf32> to vector<16x8xf32>
    %81 = vector.extract_strided_slice %36 {offsets = [0, 48], sizes = [16, 8], strides = [1, 1]} : vector<16x128xf32> to vector<16x8xf32>
    %82 = vector.extract_strided_slice %36 {offsets = [0, 80], sizes = [16, 8], strides = [1, 1]} : vector<16x128xf32> to vector<16x8xf32>
    %cst_34 = arith.constant dense<0.000000e+00> : vector<16x16xf32>
    %83 = tpu.matmul %80, %81, %cst_34 {dimension_numbers = #tpu.dot_dimension_numbers<[1], [1], [0], [0], [0, 0, 1, 0], [], []>} : vector<16x8xf32>, vector<16x8xf32>, vector<16x16xf32> -> vector<16x16xf32>
    %cst_35 = arith.constant 0.353553385 : f32
    %84 = vector.broadcast %cst_35 : f32 to vector<16x16xf32>
    %85 = arith.mulf %83, %84 : vector<16x16xf32>
    %86 = arith.addf %85, %29 : vector<16x16xf32>
    %cst_36 = arith.constant dense<0xFF800000> : vector<16xf32>
    %87 = vector.multi_reduction <maximumf>, %86, %cst_36 [1] : vector<16x16xf32> to vector<16xf32>
    %88 = vector.shape_cast %87 : vector<16xf32> to vector<16x1xf32>
    %89 = vector.broadcast %88 : vector<16x1xf32> to vector<16x16xf32>
    %90 = arith.subf %86, %89 : vector<16x16xf32>
    %91 = math.exp %90 : vector<16x16xf32>
    %cst_37 = arith.constant dense<0.000000e+00> : vector<16xf32>
    %92 = vector.multi_reduction <add>, %91, %cst_37 [1] : vector<16x16xf32> to vector<16xf32>
    %93 = vector.shape_cast %92 : vector<16xf32> to vector<16x1xf32>
    %cst_38 = arith.constant dense<0.000000e+00> : vector<16x8xf32>
    %94 = tpu.matmul %91, %82, %cst_38 {dimension_numbers = #tpu.dot_dimension_numbers<[1], [0], [0], [1], [0, 0, 1, 1], [], []>} : vector<16x16xf32>, vector<16x8xf32>, vector<16x8xf32> -> vector<16x8xf32>
    %cst_39 = arith.constant 1.000000e+00 : f32
    %95 = vector.broadcast %cst_39 : f32 to vector<16x1xf32>
    %96 = arith.divf %95, %93 : vector<16x1xf32>
    %97 = vector.broadcast %96 : vector<16x1xf32> to vector<16x8xf32>
    %98 = arith.mulf %94, %97 : vector<16x8xf32>
    %99 = vector.extract_strided_slice %33 {offsets = [16, 0], sizes = [8, 32], strides = [1, 1]} : vector<32x32xf32> to vector<8x32xf32>
    %cst_40 = arith.constant dense<0.000000e+00> : vector<16x32xf32>
    %100 = tpu.matmul %98, %99, %cst_40 {dimension_numbers = #tpu.dot_dimension_numbers<[1], [0], [0], [1], [0, 0, 1, 1], [], []>} : vector<16x8xf32>, vector<8x32xf32>, vector<16x32xf32> -> vector<16x32xf32>
    %101 = arith.addf %79, %100 : vector<16x32xf32>
    %102 = vector.extract_strided_slice %36 {offsets = [0, 24], sizes = [16, 8], strides = [1, 1]} : vector<16x128xf32> to vector<16x8xf32>
    %103 = vector.extract_strided_slice %36 {offsets = [0, 56], sizes = [16, 8], strides = [1, 1]} : vector<16x128xf32> to vector<16x8xf32>
    %104 = vector.extract_strided_slice %36 {offsets = [0, 88], sizes = [16, 8], strides = [1, 1]} : vector<16x128xf32> to vector<16x8xf32>
    %cst_41 = arith.constant dense<0.000000e+00> : vector<16x16xf32>
    %105 = tpu.matmul %102, %103, %cst_41 {dimension_numbers = #tpu.dot_dimension_numbers<[1], [1], [0], [0], [0, 0, 1, 0], [], []>} : vector<16x8xf32>, vector<16x8xf32>, vector<16x16xf32> -> vector<16x16xf32>
    %cst_42 = arith.constant 0.353553385 : f32
    %106 = vector.broadcast %cst_42 : f32 to vector<16x16xf32>
    %107 = arith.mulf %105, %106 : vector<16x16xf32>
    %108 = arith.addf %107, %29 : vector<16x16xf32>
    %cst_43 = arith.constant dense<0xFF800000> : vector<16xf32>
    %109 = vector.multi_reduction <maximumf>, %108, %cst_43 [1] : vector<16x16xf32> to vector<16xf32>
    %110 = vector.shape_cast %109 : vector<16xf32> to vector<16x1xf32>
    %111 = vector.broadcast %110 : vector<16x1xf32> to vector<16x16xf32>
    %112 = arith.subf %108, %111 : vector<16x16xf32>
    %113 = math.exp %112 : vector<16x16xf32>
    %cst_44 = arith.constant dense<0.000000e+00> : vector<16xf32>
    %114 = vector.multi_reduction <add>, %113, %cst_44 [1] : vector<16x16xf32> to vector<16xf32>
    %115 = vector.shape_cast %114 : vector<16xf32> to vector<16x1xf32>
    %cst_45 = arith.constant dense<0.000000e+00> : vector<16x8xf32>
    %116 = tpu.matmul %113, %104, %cst_45 {dimension_numbers = #tpu.dot_dimension_numbers<[1], [0], [0], [1], [0, 0, 1, 1], [], []>} : vector<16x16xf32>, vector<16x8xf32>, vector<16x8xf32> -> vector<16x8xf32>
    %cst_46 = arith.constant 1.000000e+00 : f32
    %117 = vector.broadcast %cst_46 : f32 to vector<16x1xf32>
    %118 = arith.divf %117, %115 : vector<16x1xf32>
    %119 = vector.broadcast %118 : vector<16x1xf32> to vector<16x8xf32>
    %120 = arith.mulf %116, %119 : vector<16x8xf32>
    %121 = vector.extract_strided_slice %33 {offsets = [24, 0], sizes = [8, 32], strides = [1, 1]} : vector<32x32xf32> to vector<8x32xf32>
    %cst_47 = arith.constant dense<0.000000e+00> : vector<16x32xf32>
    %122 = tpu.matmul %120, %121, %cst_47 {dimension_numbers = #tpu.dot_dimension_numbers<[1], [0], [0], [1], [0, 0, 1, 1], [], []>} : vector<16x8xf32>, vector<8x32xf32>, vector<16x32xf32> -> vector<16x32xf32>
    %123 = arith.addf %101, %122 : vector<16x32xf32>
    %124 = arith.addf %123, %28 : vector<16x32xf32>
    %cst_48 = arith.constant dense<0.000000e+00> : vector<16xf32>
    %125 = vector.multi_reduction <add>, %124, %cst_48 [1] : vector<16x32xf32> to vector<16xf32>
    %126 = vector.shape_cast %125 : vector<16xf32> to vector<16x1xf32>
    %127 = arith.mulf %124, %124 : vector<16x32xf32>
    %cst_49 = arith.constant dense<0.000000e+00> : vector<16xf32>
    %128 = vector.multi_reduction <add>, %127, %cst_49 [1] : vector<16x32xf32> to vector<16xf32>
    %129 = vector.shape_cast %128 : vector<16xf32> to vector<16x1xf32>
    %cst_50 = arith.constant 3.125000e-02 : f32
    %130 = vector.broadcast %cst_50 : f32 to vector<16x1xf32>
    %131 = arith.mulf %126, %130 : vector<16x1xf32>
    %cst_51 = arith.constant 3.125000e-02 : f32
    %132 = vector.broadcast %cst_51 : f32 to vector<16x1xf32>
    %133 = arith.mulf %129, %132 : vector<16x1xf32>
    %134 = arith.mulf %131, %131 : vector<16x1xf32>
    %135 = arith.subf %133, %134 : vector<16x1xf32>
    %136 = vector.broadcast %131 : vector<16x1xf32> to vector<16x32xf32>
    %137 = arith.subf %124, %136 : vector<16x32xf32>
    %cst_52 = arith.constant 9.99999974E-6 : f32
    %138 = vector.broadcast %cst_52 : f32 to vector<16x1xf32>
    %139 = arith.addf %135, %138 : vector<16x1xf32>
    %140 = math.rsqrt %139 : vector<16x1xf32>
    %141 = vector.broadcast %140 : vector<16x1xf32> to vector<16x32xf32>
    %142 = arith.mulf %137, %141 : vector<16x32xf32>
    %cst_53 = arith.constant dense<0.000000e+00> : vector<16x128xf32>
    %143 = tpu.matmul %142, %31, %cst_53 {dimension_numbers = #tpu.dot_dimension_numbers<[1], [0], [0], [1], [0, 0, 1, 1], [], []>} : vector<16x32xf32>, vector<32x128xf32>, vector<16x128xf32> -> vector<16x128xf32>
    %144 = vector.broadcast %32 : vector<1x128xf32> to vector<16x128xf32>
    %145 = arith.addf %143, %144 : vector<16x128xf32>
    %cst_54 = arith.constant 5.000000e-01 : f32
    %146 = vector.broadcast %cst_54 : f32 to vector<16x128xf32>
    %147 = arith.mulf %145, %146 : vector<16x128xf32>
    %cst_55 = arith.constant 0.707106769 : f32
    %148 = vector.broadcast %cst_55 : f32 to vector<16x128xf32>
    %149 = arith.mulf %145, %148 : vector<16x128xf32>
    %cst_56 = arith.constant 0.000000e+00 : f32
    %150 = vector.broadcast %cst_56 : f32 to vector<16x128xf32>
    %151 = arith.cmpf olt, %149, %150 : vector<16x128xf32>
    %cst_57 = arith.constant -1.000000e+00 : f32
    %cst_58 = arith.constant 1.000000e+00 : f32
    %152 = vector.broadcast %cst_57 : f32 to vector<16x128xf32>
    %153 = vector.broadcast %cst_58 : f32 to vector<16x128xf32>
    %154 = arith.select %151, %152, %153 : vector<16x128xi1>, vector<16x128xf32>
    %155 = math.absf %149 : vector<16x128xf32>
    %cst_59 = arith.constant 0.327591091 : f32
    %156 = vector.broadcast %cst_59 : f32 to vector<16x128xf32>
    %157 = arith.mulf %156, %155 : vector<16x128xf32>
    %cst_60 = arith.constant 1.000000e+00 : f32
    %158 = vector.broadcast %cst_60 : f32 to vector<16x128xf32>
    %159 = arith.addf %158, %157 : vector<16x128xf32>
    %cst_61 = arith.constant 1.000000e+00 : f32
    %160 = vector.broadcast %cst_61 : f32 to vector<16x128xf32>
    %161 = arith.divf %160, %159 : vector<16x128xf32>
    %cst_62 = arith.constant 1.06140542 : f32
    %162 = vector.broadcast %cst_62 : f32 to vector<16x128xf32>
    %163 = arith.mulf %162, %161 : vector<16x128xf32>
    %cst_63 = arith.constant -1.45315206 : f32
    %164 = vector.broadcast %cst_63 : f32 to vector<16x128xf32>
    %165 = arith.addf %163, %164 : vector<16x128xf32>
    %166 = arith.mulf %165, %161 : vector<16x128xf32>
    %cst_64 = arith.constant 1.42141378 : f32
    %167 = vector.broadcast %cst_64 : f32 to vector<16x128xf32>
    %168 = arith.addf %166, %167 : vector<16x128xf32>
    %169 = arith.mulf %168, %161 : vector<16x128xf32>
    %cst_65 = arith.constant -0.284496725 : f32
    %170 = vector.broadcast %cst_65 : f32 to vector<16x128xf32>
    %171 = arith.addf %169, %170 : vector<16x128xf32>
    %172 = arith.mulf %171, %161 : vector<16x128xf32>
    %cst_66 = arith.constant 0.254829586 : f32
    %173 = vector.broadcast %cst_66 : f32 to vector<16x128xf32>
    %174 = arith.addf %172, %173 : vector<16x128xf32>
    %175 = arith.mulf %174, %161 : vector<16x128xf32>
    %cst_67 = arith.constant 0.000000e+00 : f32
    %176 = vector.broadcast %cst_67 : f32 to vector<16x128xf32>
    %177 = arith.subf %176, %155 : vector<16x128xf32>
    %178 = arith.mulf %177, %155 : vector<16x128xf32>
    %179 = math.exp %178 : vector<16x128xf32>
    %180 = arith.mulf %175, %179 : vector<16x128xf32>
    %cst_68 = arith.constant 1.000000e+00 : f32
    %181 = vector.broadcast %cst_68 : f32 to vector<16x128xf32>
    %182 = arith.subf %181, %180 : vector<16x128xf32>
    %183 = arith.mulf %154, %182 : vector<16x128xf32>
    %cst_69 = arith.constant 1.000000e+00 : f32
    %184 = vector.broadcast %cst_69 : f32 to vector<16x128xf32>
    %185 = arith.addf %184, %183 : vector<16x128xf32>
    %186 = arith.mulf %147, %185 : vector<16x128xf32>
    %cst_70 = arith.constant dense<0.000000e+00> : vector<16x32xf32>
    %187 = tpu.matmul %186, %34, %cst_70 {dimension_numbers = #tpu.dot_dimension_numbers<[1], [0], [0], [1], [0, 0, 1, 1], [], []>} : vector<16x128xf32>, vector<128x32xf32>, vector<16x32xf32> -> vector<16x32xf32>
    %188 = vector.broadcast %35 : vector<1x32xf32> to vector<16x32xf32>
    %189 = arith.addf %187, %188 : vector<16x32xf32>
    %c72 = arith.constant 72 : index
    %c0_71 = arith.constant 0 : index
    %190 = vector.load %arg2[%c72, %c0_71] : memref<144x128xf32, #tpu.memory_space<vmem>>, vector<32x128xf32>
    %c104 = arith.constant 104 : index
    %c0_72 = arith.constant 0 : index
    %191 = vector.load %arg2[%c104, %c0_72] : memref<144x128xf32, #tpu.memory_space<vmem>>, vector<32x128xf32>
    %c136 = arith.constant 136 : index
    %c0_73 = arith.constant 0 : index
    %192 = vector.load %arg2[%c136, %c0_73] : memref<144x128xf32, #tpu.memory_space<vmem>>, vector<1x128xf32>
    %c312 = arith.constant 312 : index
    %c0_74 = arith.constant 0 : index
    %193 = vector.load %arg3[%c312, %c0_74] : memref<520x32xf32, #tpu.memory_space<vmem>>, vector<32x32xf32>
    %c344 = arith.constant 344 : index
    %c0_75 = arith.constant 0 : index
    %194 = vector.load %arg3[%c344, %c0_75] : memref<520x32xf32, #tpu.memory_space<vmem>>, vector<128x32xf32>
    %c472 = arith.constant 472 : index
    %c0_76 = arith.constant 0 : index
    %195 = vector.load %arg3[%c472, %c0_76] : memref<520x32xf32, #tpu.memory_space<vmem>>, vector<1x32xf32>
    %cst_77 = arith.constant dense<0.000000e+00> : vector<16x128xf32>
    %196 = tpu.matmul %189, %190, %cst_77 {dimension_numbers = #tpu.dot_dimension_numbers<[1], [0], [0], [1], [0, 0, 1, 1], [], []>} : vector<16x32xf32>, vector<32x128xf32>, vector<16x128xf32> -> vector<16x128xf32>
    %197 = vector.extract_strided_slice %196 {offsets = [0, 0], sizes = [16, 8], strides = [1, 1]} : vector<16x128xf32> to vector<16x8xf32>
    %198 = vector.extract_strided_slice %196 {offsets = [0, 32], sizes = [16, 8], strides = [1, 1]} : vector<16x128xf32> to vector<16x8xf32>
    %199 = vector.extract_strided_slice %196 {offsets = [0, 64], sizes = [16, 8], strides = [1, 1]} : vector<16x128xf32> to vector<16x8xf32>
    %cst_78 = arith.constant dense<0.000000e+00> : vector<16x16xf32>
    %200 = tpu.matmul %197, %198, %cst_78 {dimension_numbers = #tpu.dot_dimension_numbers<[1], [1], [0], [0], [0, 0, 1, 0], [], []>} : vector<16x8xf32>, vector<16x8xf32>, vector<16x16xf32> -> vector<16x16xf32>
    %cst_79 = arith.constant 0.353553385 : f32
    %201 = vector.broadcast %cst_79 : f32 to vector<16x16xf32>
    %202 = arith.mulf %200, %201 : vector<16x16xf32>
    %203 = arith.addf %202, %29 : vector<16x16xf32>
    %cst_80 = arith.constant dense<0xFF800000> : vector<16xf32>
    %204 = vector.multi_reduction <maximumf>, %203, %cst_80 [1] : vector<16x16xf32> to vector<16xf32>
    %205 = vector.shape_cast %204 : vector<16xf32> to vector<16x1xf32>
    %206 = vector.broadcast %205 : vector<16x1xf32> to vector<16x16xf32>
    %207 = arith.subf %203, %206 : vector<16x16xf32>
    %208 = math.exp %207 : vector<16x16xf32>
    %cst_81 = arith.constant dense<0.000000e+00> : vector<16xf32>
    %209 = vector.multi_reduction <add>, %208, %cst_81 [1] : vector<16x16xf32> to vector<16xf32>
    %210 = vector.shape_cast %209 : vector<16xf32> to vector<16x1xf32>
    %cst_82 = arith.constant dense<0.000000e+00> : vector<16x8xf32>
    %211 = tpu.matmul %208, %199, %cst_82 {dimension_numbers = #tpu.dot_dimension_numbers<[1], [0], [0], [1], [0, 0, 1, 1], [], []>} : vector<16x16xf32>, vector<16x8xf32>, vector<16x8xf32> -> vector<16x8xf32>
    %cst_83 = arith.constant 1.000000e+00 : f32
    %212 = vector.broadcast %cst_83 : f32 to vector<16x1xf32>
    %213 = arith.divf %212, %210 : vector<16x1xf32>
    %214 = vector.broadcast %213 : vector<16x1xf32> to vector<16x8xf32>
    %215 = arith.mulf %211, %214 : vector<16x8xf32>
    %216 = vector.extract_strided_slice %193 {offsets = [0, 0], sizes = [8, 32], strides = [1, 1]} : vector<32x32xf32> to vector<8x32xf32>
    %cst_84 = arith.constant dense<0.000000e+00> : vector<16x32xf32>
    %217 = tpu.matmul %215, %216, %cst_84 {dimension_numbers = #tpu.dot_dimension_numbers<[1], [0], [0], [1], [0, 0, 1, 1], [], []>} : vector<16x8xf32>, vector<8x32xf32>, vector<16x32xf32> -> vector<16x32xf32>
    %218 = vector.extract_strided_slice %196 {offsets = [0, 8], sizes = [16, 8], strides = [1, 1]} : vector<16x128xf32> to vector<16x8xf32>
    %219 = vector.extract_strided_slice %196 {offsets = [0, 40], sizes = [16, 8], strides = [1, 1]} : vector<16x128xf32> to vector<16x8xf32>
    %220 = vector.extract_strided_slice %196 {offsets = [0, 72], sizes = [16, 8], strides = [1, 1]} : vector<16x128xf32> to vector<16x8xf32>
    %cst_85 = arith.constant dense<0.000000e+00> : vector<16x16xf32>
    %221 = tpu.matmul %218, %219, %cst_85 {dimension_numbers = #tpu.dot_dimension_numbers<[1], [1], [0], [0], [0, 0, 1, 0], [], []>} : vector<16x8xf32>, vector<16x8xf32>, vector<16x16xf32> -> vector<16x16xf32>
    %cst_86 = arith.constant 0.353553385 : f32
    %222 = vector.broadcast %cst_86 : f32 to vector<16x16xf32>
    %223 = arith.mulf %221, %222 : vector<16x16xf32>
    %224 = arith.addf %223, %29 : vector<16x16xf32>
    %cst_87 = arith.constant dense<0xFF800000> : vector<16xf32>
    %225 = vector.multi_reduction <maximumf>, %224, %cst_87 [1] : vector<16x16xf32> to vector<16xf32>
    %226 = vector.shape_cast %225 : vector<16xf32> to vector<16x1xf32>
    %227 = vector.broadcast %226 : vector<16x1xf32> to vector<16x16xf32>
    %228 = arith.subf %224, %227 : vector<16x16xf32>
    %229 = math.exp %228 : vector<16x16xf32>
    %cst_88 = arith.constant dense<0.000000e+00> : vector<16xf32>
    %230 = vector.multi_reduction <add>, %229, %cst_88 [1] : vector<16x16xf32> to vector<16xf32>
    %231 = vector.shape_cast %230 : vector<16xf32> to vector<16x1xf32>
    %cst_89 = arith.constant dense<0.000000e+00> : vector<16x8xf32>
    %232 = tpu.matmul %229, %220, %cst_89 {dimension_numbers = #tpu.dot_dimension_numbers<[1], [0], [0], [1], [0, 0, 1, 1], [], []>} : vector<16x16xf32>, vector<16x8xf32>, vector<16x8xf32> -> vector<16x8xf32>
    %cst_90 = arith.constant 1.000000e+00 : f32
    %233 = vector.broadcast %cst_90 : f32 to vector<16x1xf32>
    %234 = arith.divf %233, %231 : vector<16x1xf32>
    %235 = vector.broadcast %234 : vector<16x1xf32> to vector<16x8xf32>
    %236 = arith.mulf %232, %235 : vector<16x8xf32>
    %237 = vector.extract_strided_slice %193 {offsets = [8, 0], sizes = [8, 32], strides = [1, 1]} : vector<32x32xf32> to vector<8x32xf32>
    %cst_91 = arith.constant dense<0.000000e+00> : vector<16x32xf32>
    %238 = tpu.matmul %236, %237, %cst_91 {dimension_numbers = #tpu.dot_dimension_numbers<[1], [0], [0], [1], [0, 0, 1, 1], [], []>} : vector<16x8xf32>, vector<8x32xf32>, vector<16x32xf32> -> vector<16x32xf32>
    %239 = arith.addf %217, %238 : vector<16x32xf32>
    %240 = vector.extract_strided_slice %196 {offsets = [0, 16], sizes = [16, 8], strides = [1, 1]} : vector<16x128xf32> to vector<16x8xf32>
    %241 = vector.extract_strided_slice %196 {offsets = [0, 48], sizes = [16, 8], strides = [1, 1]} : vector<16x128xf32> to vector<16x8xf32>
    %242 = vector.extract_strided_slice %196 {offsets = [0, 80], sizes = [16, 8], strides = [1, 1]} : vector<16x128xf32> to vector<16x8xf32>
    %cst_92 = arith.constant dense<0.000000e+00> : vector<16x16xf32>
    %243 = tpu.matmul %240, %241, %cst_92 {dimension_numbers = #tpu.dot_dimension_numbers<[1], [1], [0], [0], [0, 0, 1, 0], [], []>} : vector<16x8xf32>, vector<16x8xf32>, vector<16x16xf32> -> vector<16x16xf32>
    %cst_93 = arith.constant 0.353553385 : f32
    %244 = vector.broadcast %cst_93 : f32 to vector<16x16xf32>
    %245 = arith.mulf %243, %244 : vector<16x16xf32>
    %246 = arith.addf %245, %29 : vector<16x16xf32>
    %cst_94 = arith.constant dense<0xFF800000> : vector<16xf32>
    %247 = vector.multi_reduction <maximumf>, %246, %cst_94 [1] : vector<16x16xf32> to vector<16xf32>
    %248 = vector.shape_cast %247 : vector<16xf32> to vector<16x1xf32>
    %249 = vector.broadcast %248 : vector<16x1xf32> to vector<16x16xf32>
    %250 = arith.subf %246, %249 : vector<16x16xf32>
    %251 = math.exp %250 : vector<16x16xf32>
    %cst_95 = arith.constant dense<0.000000e+00> : vector<16xf32>
    %252 = vector.multi_reduction <add>, %251, %cst_95 [1] : vector<16x16xf32> to vector<16xf32>
    %253 = vector.shape_cast %252 : vector<16xf32> to vector<16x1xf32>
    %cst_96 = arith.constant dense<0.000000e+00> : vector<16x8xf32>
    %254 = tpu.matmul %251, %242, %cst_96 {dimension_numbers = #tpu.dot_dimension_numbers<[1], [0], [0], [1], [0, 0, 1, 1], [], []>} : vector<16x16xf32>, vector<16x8xf32>, vector<16x8xf32> -> vector<16x8xf32>
    %cst_97 = arith.constant 1.000000e+00 : f32
    %255 = vector.broadcast %cst_97 : f32 to vector<16x1xf32>
    %256 = arith.divf %255, %253 : vector<16x1xf32>
    %257 = vector.broadcast %256 : vector<16x1xf32> to vector<16x8xf32>
    %258 = arith.mulf %254, %257 : vector<16x8xf32>
    %259 = vector.extract_strided_slice %193 {offsets = [16, 0], sizes = [8, 32], strides = [1, 1]} : vector<32x32xf32> to vector<8x32xf32>
    %cst_98 = arith.constant dense<0.000000e+00> : vector<16x32xf32>
    %260 = tpu.matmul %258, %259, %cst_98 {dimension_numbers = #tpu.dot_dimension_numbers<[1], [0], [0], [1], [0, 0, 1, 1], [], []>} : vector<16x8xf32>, vector<8x32xf32>, vector<16x32xf32> -> vector<16x32xf32>
    %261 = arith.addf %239, %260 : vector<16x32xf32>
    %262 = vector.extract_strided_slice %196 {offsets = [0, 24], sizes = [16, 8], strides = [1, 1]} : vector<16x128xf32> to vector<16x8xf32>
    %263 = vector.extract_strided_slice %196 {offsets = [0, 56], sizes = [16, 8], strides = [1, 1]} : vector<16x128xf32> to vector<16x8xf32>
    %264 = vector.extract_strided_slice %196 {offsets = [0, 88], sizes = [16, 8], strides = [1, 1]} : vector<16x128xf32> to vector<16x8xf32>
    %cst_99 = arith.constant dense<0.000000e+00> : vector<16x16xf32>
    %265 = tpu.matmul %262, %263, %cst_99 {dimension_numbers = #tpu.dot_dimension_numbers<[1], [1], [0], [0], [0, 0, 1, 0], [], []>} : vector<16x8xf32>, vector<16x8xf32>, vector<16x16xf32> -> vector<16x16xf32>
    %cst_100 = arith.constant 0.353553385 : f32
    %266 = vector.broadcast %cst_100 : f32 to vector<16x16xf32>
    %267 = arith.mulf %265, %266 : vector<16x16xf32>
    %268 = arith.addf %267, %29 : vector<16x16xf32>
    %cst_101 = arith.constant dense<0xFF800000> : vector<16xf32>
    %269 = vector.multi_reduction <maximumf>, %268, %cst_101 [1] : vector<16x16xf32> to vector<16xf32>
    %270 = vector.shape_cast %269 : vector<16xf32> to vector<16x1xf32>
    %271 = vector.broadcast %270 : vector<16x1xf32> to vector<16x16xf32>
    %272 = arith.subf %268, %271 : vector<16x16xf32>
    %273 = math.exp %272 : vector<16x16xf32>
    %cst_102 = arith.constant dense<0.000000e+00> : vector<16xf32>
    %274 = vector.multi_reduction <add>, %273, %cst_102 [1] : vector<16x16xf32> to vector<16xf32>
    %275 = vector.shape_cast %274 : vector<16xf32> to vector<16x1xf32>
    %cst_103 = arith.constant dense<0.000000e+00> : vector<16x8xf32>
    %276 = tpu.matmul %273, %264, %cst_103 {dimension_numbers = #tpu.dot_dimension_numbers<[1], [0], [0], [1], [0, 0, 1, 1], [], []>} : vector<16x16xf32>, vector<16x8xf32>, vector<16x8xf32> -> vector<16x8xf32>
    %cst_104 = arith.constant 1.000000e+00 : f32
    %277 = vector.broadcast %cst_104 : f32 to vector<16x1xf32>
    %278 = arith.divf %277, %275 : vector<16x1xf32>
    %279 = vector.broadcast %278 : vector<16x1xf32> to vector<16x8xf32>
    %280 = arith.mulf %276, %279 : vector<16x8xf32>
    %281 = vector.extract_strided_slice %193 {offsets = [24, 0], sizes = [8, 32], strides = [1, 1]} : vector<32x32xf32> to vector<8x32xf32>
    %cst_105 = arith.constant dense<0.000000e+00> : vector<16x32xf32>
    %282 = tpu.matmul %280, %281, %cst_105 {dimension_numbers = #tpu.dot_dimension_numbers<[1], [0], [0], [1], [0, 0, 1, 1], [], []>} : vector<16x8xf32>, vector<8x32xf32>, vector<16x32xf32> -> vector<16x32xf32>
    %283 = arith.addf %261, %282 : vector<16x32xf32>
    %284 = arith.addf %283, %189 : vector<16x32xf32>
    %cst_106 = arith.constant dense<0.000000e+00> : vector<16xf32>
    %285 = vector.multi_reduction <add>, %284, %cst_106 [1] : vector<16x32xf32> to vector<16xf32>
    %286 = vector.shape_cast %285 : vector<16xf32> to vector<16x1xf32>
    %287 = arith.mulf %284, %284 : vector<16x32xf32>
    %cst_107 = arith.constant dense<0.000000e+00> : vector<16xf32>
    %288 = vector.multi_reduction <add>, %287, %cst_107 [1] : vector<16x32xf32> to vector<16xf32>
    %289 = vector.shape_cast %288 : vector<16xf32> to vector<16x1xf32>
    %cst_108 = arith.constant 3.125000e-02 : f32
    %290 = vector.broadcast %cst_108 : f32 to vector<16x1xf32>
    %291 = arith.mulf %286, %290 : vector<16x1xf32>
    %cst_109 = arith.constant 3.125000e-02 : f32
    %292 = vector.broadcast %cst_109 : f32 to vector<16x1xf32>
    %293 = arith.mulf %289, %292 : vector<16x1xf32>
    %294 = arith.mulf %291, %291 : vector<16x1xf32>
    %295 = arith.subf %293, %294 : vector<16x1xf32>
    %296 = vector.broadcast %291 : vector<16x1xf32> to vector<16x32xf32>
    %297 = arith.subf %284, %296 : vector<16x32xf32>
    %cst_110 = arith.constant 9.99999974E-6 : f32
    %298 = vector.broadcast %cst_110 : f32 to vector<16x1xf32>
    %299 = arith.addf %295, %298 : vector<16x1xf32>
    %300 = math.rsqrt %299 : vector<16x1xf32>
    %301 = vector.broadcast %300 : vector<16x1xf32> to vector<16x32xf32>
    %302 = arith.mulf %297, %301 : vector<16x32xf32>
    %cst_111 = arith.constant dense<0.000000e+00> : vector<16x128xf32>
    %303 = tpu.matmul %302, %191, %cst_111 {dimension_numbers = #tpu.dot_dimension_numbers<[1], [0], [0], [1], [0, 0, 1, 1], [], []>} : vector<16x32xf32>, vector<32x128xf32>, vector<16x128xf32> -> vector<16x128xf32>
    %304 = vector.broadcast %192 : vector<1x128xf32> to vector<16x128xf32>
    %305 = arith.addf %303, %304 : vector<16x128xf32>
    %cst_112 = arith.constant 5.000000e-01 : f32
    %306 = vector.broadcast %cst_112 : f32 to vector<16x128xf32>
    %307 = arith.mulf %305, %306 : vector<16x128xf32>
    %cst_113 = arith.constant 0.707106769 : f32
    %308 = vector.broadcast %cst_113 : f32 to vector<16x128xf32>
    %309 = arith.mulf %305, %308 : vector<16x128xf32>
    %cst_114 = arith.constant 0.000000e+00 : f32
    %310 = vector.broadcast %cst_114 : f32 to vector<16x128xf32>
    %311 = arith.cmpf olt, %309, %310 : vector<16x128xf32>
    %cst_115 = arith.constant -1.000000e+00 : f32
    %cst_116 = arith.constant 1.000000e+00 : f32
    %312 = vector.broadcast %cst_115 : f32 to vector<16x128xf32>
    %313 = vector.broadcast %cst_116 : f32 to vector<16x128xf32>
    %314 = arith.select %311, %312, %313 : vector<16x128xi1>, vector<16x128xf32>
    %315 = math.absf %309 : vector<16x128xf32>
    %cst_117 = arith.constant 0.327591091 : f32
    %316 = vector.broadcast %cst_117 : f32 to vector<16x128xf32>
    %317 = arith.mulf %316, %315 : vector<16x128xf32>
    %cst_118 = arith.constant 1.000000e+00 : f32
    %318 = vector.broadcast %cst_118 : f32 to vector<16x128xf32>
    %319 = arith.addf %318, %317 : vector<16x128xf32>
    %cst_119 = arith.constant 1.000000e+00 : f32
    %320 = vector.broadcast %cst_119 : f32 to vector<16x128xf32>
    %321 = arith.divf %320, %319 : vector<16x128xf32>
    %cst_120 = arith.constant 1.06140542 : f32
    %322 = vector.broadcast %cst_120 : f32 to vector<16x128xf32>
    %323 = arith.mulf %322, %321 : vector<16x128xf32>
    %cst_121 = arith.constant -1.45315206 : f32
    %324 = vector.broadcast %cst_121 : f32 to vector<16x128xf32>
    %325 = arith.addf %323, %324 : vector<16x128xf32>
    %326 = arith.mulf %325, %321 : vector<16x128xf32>
    %cst_122 = arith.constant 1.42141378 : f32
    %327 = vector.broadcast %cst_122 : f32 to vector<16x128xf32>
    %328 = arith.addf %326, %327 : vector<16x128xf32>
    %329 = arith.mulf %328, %321 : vector<16x128xf32>
    %cst_123 = arith.constant -0.284496725 : f32
    %330 = vector.broadcast %cst_123 : f32 to vector<16x128xf32>
    %331 = arith.addf %329, %330 : vector<16x128xf32>
    %332 = arith.mulf %331, %321 : vector<16x128xf32>
    %cst_124 = arith.constant 0.254829586 : f32
    %333 = vector.broadcast %cst_124 : f32 to vector<16x128xf32>
    %334 = arith.addf %332, %333 : vector<16x128xf32>
    %335 = arith.mulf %334, %321 : vector<16x128xf32>
    %cst_125 = arith.constant 0.000000e+00 : f32
    %336 = vector.broadcast %cst_125 : f32 to vector<16x128xf32>
    %337 = arith.subf %336, %315 : vector<16x128xf32>
    %338 = arith.mulf %337, %315 : vector<16x128xf32>
    %339 = math.exp %338 : vector<16x128xf32>
    %340 = arith.mulf %335, %339 : vector<16x128xf32>
    %cst_126 = arith.constant 1.000000e+00 : f32
    %341 = vector.broadcast %cst_126 : f32 to vector<16x128xf32>
    %342 = arith.subf %341, %340 : vector<16x128xf32>
    %343 = arith.mulf %314, %342 : vector<16x128xf32>
    %cst_127 = arith.constant 1.000000e+00 : f32
    %344 = vector.broadcast %cst_127 : f32 to vector<16x128xf32>
    %345 = arith.addf %344, %343 : vector<16x128xf32>
    %346 = arith.mulf %307, %345 : vector<16x128xf32>
    %cst_128 = arith.constant dense<0.000000e+00> : vector<16x32xf32>
    %347 = tpu.matmul %346, %194, %cst_128 {dimension_numbers = #tpu.dot_dimension_numbers<[1], [0], [0], [1], [0, 0, 1, 1], [], []>} : vector<16x128xf32>, vector<128x32xf32>, vector<16x32xf32> -> vector<16x32xf32>
    %348 = vector.broadcast %195 : vector<1x32xf32> to vector<16x32xf32>
    %349 = arith.addf %347, %348 : vector<16x32xf32>
    %350 = tpu.iota {dimensions = array<i32: 1>} : vector<8x16xi32>
    %351 = vector.broadcast %1 : vector<8x1xi32> to vector<8x16xi32>
    %352 = arith.cmpi eq, %351, %350 : vector<8x16xi32>
    %353 = arith.extui %352 : vector<8x16xi1> to vector<8x16xi32>
    %354 = arith.sitofp %353 : vector<8x16xi32> to vector<8x16xf32>
    %cst_129 = arith.constant dense<0.000000e+00> : vector<8x32xf32>
    %355 = tpu.matmul %354, %349, %cst_129 {dimension_numbers = #tpu.dot_dimension_numbers<[1], [0], [0], [1], [0, 0, 1, 1], [], []>} : vector<8x16xf32>, vector<16x32xf32>, vector<8x32xf32> -> vector<8x32xf32>
    %c480 = arith.constant 480 : index
    %c0_130 = arith.constant 0 : index
    %356 = vector.load %arg3[%c480, %c0_130] : memref<520x32xf32, #tpu.memory_space<vmem>>, vector<32x32xf32>
    %c512 = arith.constant 512 : index
    %c0_131 = arith.constant 0 : index
    %357 = vector.load %arg3[%c512, %c0_131] : memref<520x32xf32, #tpu.memory_space<vmem>>, vector<1x32xf32>
    %cst_132 = arith.constant dense<0.000000e+00> : vector<8x32xf32>
    %358 = tpu.matmul %355, %356, %cst_132 {dimension_numbers = #tpu.dot_dimension_numbers<[1], [0], [0], [1], [0, 0, 1, 1], [], []>} : vector<8x32xf32>, vector<32x32xf32>, vector<8x32xf32> -> vector<8x32xf32>
    %359 = vector.broadcast %357 : vector<1x32xf32> to vector<8x32xf32>
    %360 = arith.addf %358, %359 : vector<8x32xf32>
    %cst_133 = arith.constant 5.000000e-01 : f32
    %361 = vector.broadcast %cst_133 : f32 to vector<8x32xf32>
    %362 = arith.mulf %360, %361 : vector<8x32xf32>
    %cst_134 = arith.constant 0.707106769 : f32
    %363 = vector.broadcast %cst_134 : f32 to vector<8x32xf32>
    %364 = arith.mulf %360, %363 : vector<8x32xf32>
    %cst_135 = arith.constant 0.000000e+00 : f32
    %365 = vector.broadcast %cst_135 : f32 to vector<8x32xf32>
    %366 = arith.cmpf olt, %364, %365 : vector<8x32xf32>
    %cst_136 = arith.constant -1.000000e+00 : f32
    %cst_137 = arith.constant 1.000000e+00 : f32
    %367 = vector.broadcast %cst_136 : f32 to vector<8x32xf32>
    %368 = vector.broadcast %cst_137 : f32 to vector<8x32xf32>
    %369 = arith.select %366, %367, %368 : vector<8x32xi1>, vector<8x32xf32>
    %370 = math.absf %364 : vector<8x32xf32>
    %cst_138 = arith.constant 0.327591091 : f32
    %371 = vector.broadcast %cst_138 : f32 to vector<8x32xf32>
    %372 = arith.mulf %371, %370 : vector<8x32xf32>
    %cst_139 = arith.constant 1.000000e+00 : f32
    %373 = vector.broadcast %cst_139 : f32 to vector<8x32xf32>
    %374 = arith.addf %373, %372 : vector<8x32xf32>
    %cst_140 = arith.constant 1.000000e+00 : f32
    %375 = vector.broadcast %cst_140 : f32 to vector<8x32xf32>
    %376 = arith.divf %375, %374 : vector<8x32xf32>
    %cst_141 = arith.constant 1.06140542 : f32
    %377 = vector.broadcast %cst_141 : f32 to vector<8x32xf32>
    %378 = arith.mulf %377, %376 : vector<8x32xf32>
    %cst_142 = arith.constant -1.45315206 : f32
    %379 = vector.broadcast %cst_142 : f32 to vector<8x32xf32>
    %380 = arith.addf %378, %379 : vector<8x32xf32>
    %381 = arith.mulf %380, %376 : vector<8x32xf32>
    %cst_143 = arith.constant 1.42141378 : f32
    %382 = vector.broadcast %cst_143 : f32 to vector<8x32xf32>
    %383 = arith.addf %381, %382 : vector<8x32xf32>
    %384 = arith.mulf %383, %376 : vector<8x32xf32>
    %cst_144 = arith.constant -0.284496725 : f32
    %385 = vector.broadcast %cst_144 : f32 to vector<8x32xf32>
    %386 = arith.addf %384, %385 : vector<8x32xf32>
    %387 = arith.mulf %386, %376 : vector<8x32xf32>
    %cst_145 = arith.constant 0.254829586 : f32
    %388 = vector.broadcast %cst_145 : f32 to vector<8x32xf32>
    %389 = arith.addf %387, %388 : vector<8x32xf32>
    %390 = arith.mulf %389, %376 : vector<8x32xf32>
    %cst_146 = arith.constant 0.000000e+00 : f32
    %391 = vector.broadcast %cst_146 : f32 to vector<8x32xf32>
    %392 = arith.subf %391, %370 : vector<8x32xf32>
    %393 = arith.mulf %392, %370 : vector<8x32xf32>
    %394 = math.exp %393 : vector<8x32xf32>
    %395 = arith.mulf %390, %394 : vector<8x32xf32>
    %cst_147 = arith.constant 1.000000e+00 : f32
    %396 = vector.broadcast %cst_147 : f32 to vector<8x32xf32>
    %397 = arith.subf %396, %395 : vector<8x32xf32>
    %398 = arith.mulf %369, %397 : vector<8x32xf32>
    %cst_148 = arith.constant 1.000000e+00 : f32
    %399 = vector.broadcast %cst_148 : f32 to vector<8x32xf32>
    %400 = arith.addf %399, %398 : vector<8x32xf32>
    %401 = arith.mulf %362, %400 : vector<8x32xf32>
    %cst_149 = arith.constant dense<0.000000e+00> : vector<8x128xf32>
    %402 = tpu.matmul %401, %2, %cst_149 {dimension_numbers = #tpu.dot_dimension_numbers<[1], [1], [0], [0], [0, 0, 1, 0], [], []>} : vector<8x32xf32>, vector<128x32xf32>, vector<8x128xf32> -> vector<8x128xf32>
    %c0_150 = arith.constant 0 : index
    %c0_151 = arith.constant 0 : index
    %403 = vector.load %arg4[%c0_150, %c0_151] : memref<8x128xf32, #tpu.memory_space<vmem>>, vector<8x128xf32>
    tpu.vector_store %arg4[%c0_150, %c0_151], %402 {strides = array<i32>} : memref<8x128xf32, #tpu.memory_space<vmem>>, vector<8x128xf32>,
    return
  }
}

</mosaic_0001>

<bundles_post_ra>
// kernel: _bert_forward_impl.1
= control target key start
LH: loop header
LB: loop body
LE: loop exit
PB: predicated region body
PF: predicated region fallthrough
CT: control target
= control target key end

     0   :  { %v2361_v2 = vmov 0   ;;  %s3073_s0 = inlined_call_operand.vmem [shape: s32[24,1], index: 0, kind: input, shape index: {}]   ;;  %s3074_s1 = inlined_call_operand.vmem [shape: f32[16,16], index: 1, kind: input, shape index: {}]   ;;  %s3075_s2 = inlined_call_operand.vmem [shape: f32[144,128], index: 2, kind: input, shape index: {}]   ;;  %s3076_s3 = inlined_call_operand.vmem [shape: f32[520,32], index: 3, kind: input, shape index: {}]   ;;  %s3077_s4 = inlined_call_operand.hbm [shape: f32[8,128], index: 4, kind: output, shape index: {}]  }
   0x1   :  { %v18_v0 = vld [vmem:[%s3073_s0] sm:$0xff]  ;;  %v36_v1 = vld [vmem:[%s3076_s3 + $0x78] sm:$0xff]  ;;  %2174 = vset.pattern.permute.xlu0 %v2361_v2  ;;  %v35_v3 = vld [vmem:[%s3076_s3 + $0x70] sm:$0xff]  ;;  %2215 = vset.pattern.permute.xlu1 %v2361_v2 }
   0x2   :  { %53 = vmatpush.msra.mxu1 %v36_v1  ;;  %42 = vperm.xlu0 %2174, %v18_v0   ;;  %v34_v4 = vld [vmem:[%s3076_s3 + $0x68] sm:$0xff]  ;;  %v33_v5 = vld [vmem:[%s3076_s3 + $0x60] sm:$0xff]  ;;  %v32_v6 = vld [vmem:[%s3076_s3 + $0x58] sm:$0xff] }
   0x3   :  { %v19_v7 = vld [vmem:[%s3073_s0 + $0x8] sm:$0xff] }
   0x4   :  { %54 = vmatpush.msra.mxu1 %v35_v3 }
   0x6   :  { %55 = vmatpush.msra.mxu1 %v34_v4 }
   0x8   :  { %56 = vmatpush.msra.mxu1 %v33_v5 }
   0x9   :  { %9 = vsyncpa [#allocation3], 0  ;;  %v31_v8 = vld [vmem:[%s3076_s3 + $0x50] sm:$0xff]  ;;  %v30_v9 = vld [vmem:[%s3076_s3 + $0x48] sm:$0xff]  ;;  %v39_v19 = vlaneseq  ;;  %v2362_v22 = vmov 1.0   ;;  %vm76_vm2 = vcmask 261120  }
   0xa   :  { %57 = vmatpush.msra.mxu1 %v32_v6  ;;  %45 = vperm.xlu0 %2174, %v19_v7   ;;  %v29_v10 = vld [vmem:[%s3076_s3 + $0x40] sm:$0xff]  ;;  %v28_v11 = vld [vmem:[%s3076_s3 + $0x38] sm:$0xff]  ;;  %v27_v12 = vld [vmem:[%s3076_s3 + $0x30] sm:$0xff]  ;;  %s2363_s11 = smov 96   ;;  %s2364_s12 = smov 88   ;;  %vm192_vm9 = vcmask 64512  }
   0xb   :  { %v26_v13 = vld [vmem:[%s3076_s3 + $0x28] sm:$0xff]  ;;  %v25_v14 = vld [vmem:[%s3076_s3 + $0x20] sm:$0xff]  ;;  %v24_v15 = vld [vmem:[%s3076_s3 + $0x18] sm:$0xff]  ;;  %v2455_v20 = vand.u32 127, %v39_v19  ;;  %s2365_s13 = smov 120   ;;  %vm228_vm10 = vcmask 130048  }
   0xc   :  { %58 = vmatpush.msra.mxu1 %v31_v8  ;;  %v23_v16 = vld [vmem:[%s3076_s3 + $0x10] sm:$0xff]  ;;  %v22_v17 = vld [vmem:[%s3076_s3 + $0x8] sm:$0xff]  ;;  %v21_v18 = vld [vmem:[%s3076_s3] sm:$0xff]  ;;  %s2366_s18 = smov 64   ;;  %s2367_s19 = smov 56  }
   0xd   :  { %v37_v24 = vld [vmem:[%s3076_s3 + $0x80] sm:$0xff]  ;;  %v38_v28 = vld [vmem:[%s3076_s3 + $0x88] sm:$0xff]  ;;  %v130_v36 = vld [vmem:[%s3075_s2 + $0x18] sm:$0xff]  ;;  %s2368_s20 = smov 80   ;;  %s2369_s21 = smov 112  }
   0xe   :  { %59 = vmatpush.msra.mxu1 %v30_v9  ;;  %175 = vmatpush.msra.mxu2 %v130_v36  ;;  %v129_v37 = vld [vmem:[%s3075_s2 + $0x10] sm:$0xff]  ;;  %v128_v38 = vld [vmem:[%s3075_s2 + $0x8] sm:$0xff]  ;;  %v127_v40 = vld [vmem:[%s3075_s2] sm:$0xff]  ;;  %s2370_s22 = smov 72   ;;  %s2371_s23 = smov 104  }
   0xf   :  { %s2372_s28 = smov 48   ;;  %s2373_s29 = smov 40  }
  0x10   :  { %60 = vmatpush.msra.mxu1 %v29_v10  ;;  %176 = vmatpush.msra.mxu2 %v129_v37  ;;  %s2052_s7 = sshll.u32 %s3077_s4, 4  ;;  %s2053_s7 = int_to_ptr.hbm [resolvable:$true] %s2052_s7 }
  0x12   :  { %61 = vmatpush.msra.mxu1 %v28_v11  ;;  %177 = vmatpush.msra.mxu2 %v128_v38 }
  0x14   :  { %62 = vmatpush.msra.mxu1 %v27_v12  ;;  %178 = vmatpush.msra.mxu2 %v127_v40 }
  0x16   :  { %63 = vmatpush.msra.mxu1 %v26_v13  ;;  %v2512_v13 = vld [vmem:[%s3074_s1] sm:$0xff] }
  0x18   :  { %64 = vmatpush.msra.mxu1 %v25_v14 }
  0x1a   :  { %65 = vmatpush.msra.mxu1 %v24_v15 }
  0x1c   :  { %66 = vmatpush.msra.mxu1 %v23_v16 }
  0x1e   :  { %67 = vmatpush.msra.mxu1 %v22_v17 }
  0x20   :  { %68 = vmatpush.msra.mxu1 %v21_v18  ;;  %v2519_v18 = vld [vmem:[%s3074_s1 + $0x8] sm:$0xff] }
  0x74   :  { %v43_v21 = vpop.permute.xlu0 %42 }
  0x75   :  { %vm47_vm0 = vcmp.eq.s32.totalorder %v43_v21, %v2455_v20 }
  0x76   :  { %2063 = vmatmul.msk.f32.vlgmr.msra.gmra.mxu1 %vm47_vm0, %v2362_v22 }
  0x7c   :  { %v46_v23 = vpop.permute.xlu0 %45 }
  0x7d   :  { %vm48_vm1 = vcmp.eq.s32.totalorder %v46_v23, %v2455_v20 }
  0x7e   :  { %2064 = vmatmul.msk.f32.gmra.mxu1 %vm48_vm1, %v2362_v22 }
  0xf3   :  { %v70_v25 = vpop.f32.mrf.mxu1 }
  0xf4   :  { %v71_v26 = vadd.f32 %v70_v25, %v37_v24 }
  0xf6   :  { %v77_v27 = vsel %vm76_vm2, %v71_v26, 0.0  ;;  %v83_v29 = vmul.f32 %v71_v26, %v71_v26 }
  0xf7   :  { %78 = vadd.xlane.f32.xlu1 %v77_v27 }
  0xf8   :  { %v85_v32 = vsel %vm76_vm2, %v83_v29, 0.0 }
  0xfb   :  { %v73_v30 = vpop.f32.mrf.mxu1 }
  0xfc   :  { %v74_v31 = vadd.f32 %v73_v30, %v38_v28 }
  0xfe   :  { %v80_v33 = vsel %vm76_vm2, %v74_v31, 0.0  ;;  %v84_v34 = vmul.f32 %v74_v31, %v74_v31 }
  0xff   :  { %86 = vadd.xlane.f32.xlu1 %v85_v32  ;;  %81 = vadd.xlane.f32.xlu2 %v80_v33 }
 0x100   :  { %v88_v35 = vsel %vm76_vm2, %v84_v34, 0.0 }
 0x107   :  { %89 = vadd.xlane.f32.xlu2 %v88_v35 }
 0x16a   :  { %v79_v39 = vpop.xlane.xlu1 %78 }
 0x16b   :  { %v91_v41 = vmul.f32 0.03125, %v79_v39 }
 0x16d   :  { %v95_v44 = vmul.f32 %v91_v41, %v91_v41  ;;  %v99_v62 = vsub.f32 %v71_v26, %v91_v41 }
 0x172   :  { %v87_v42 = vpop.xlane.xlu1 %86  ;;  %v82_v43 = vpop.xlane.xlu2 %81 }
 0x173   :  { %v93_v45 = vmul.f32 0.03125, %v87_v42  ;;  %v92_v48 = vmul.f32 0.03125, %v82_v43 }
 0x175   :  { %v97_v46 = vsub.f32 %v93_v45, %v95_v44  ;;  %v96_v50 = vmul.f32 %v92_v48, %v92_v48  ;;  %v100_v5 = vsub.f32 %v74_v31, %v92_v48 }
 0x177   :  { %v101_v47 = vadd.f32 1e-05, %v97_v46 }
 0x179   :  { %2221 = vrsqrt.f32 %v101_v47  ;;  %vm109_vm4 = vweird.f32 %v101_v47 }
 0x17a   :  { %v90_v49 = vpop.xlane.xlu2 %89 }
 0x17b   :  { %v94_v51 = vmul.f32 0.03125, %v90_v49 }
 0x17d   :  { %v98_v52 = vsub.f32 %v94_v51, %v96_v50 }
 0x17f   :  { %v2222_v53 = vpop.eup %2221  ;;  %v102_v54 = vadd.f32 1e-05, %v98_v52 }
 0x180   :  { %v104_v55 = vmul.f32 %v2222_v53, %v101_v47  ;;  %vm110_vm3 = vweird.f32 %v2222_v53 }
 0x181   :  { %2223 = vrsqrt.f32 %v102_v54  ;;  %vm111_vm5 = vmor %vm109_vm4, %vm110_vm3  ;;  %vm119_vm7 = vweird.f32 %v102_v54 }
 0x182   :  { %v105_v56 = vmul.f32 %v2222_v53, %v104_v55 }
 0x184   :  { %v106_v57 = vmul.f32 0.5, %v105_v56 }
 0x186   :  { %v107_v58 = vsub.f32 1.5, %v106_v57  ;;  %v136_v57 = vld [vmem:[%s3076_s3 + $0x90] sm:$0xff] }
 0x187   :  { %v2224_v59 = vpop.eup %2223 }
 0x188   :  { %v114_v60 = vmul.f32 %v2224_v59, %v102_v54  ;;  %v108_v61 = vmul.f32 %v2222_v53, %v107_v58  ;;  %vm120_vm6 = vweird.f32 %v2224_v59 }
 0x189   :  { %vm121_vm8 = vmor %vm119_vm7, %vm120_vm6 }
 0x18a   :  { %v115_v63 = vmul.f32 %v2224_v59, %v114_v60  ;;  %v112_v0 = vsel %vm111_vm5, %v2222_v53, %v108_v61 }
 0x18b   :  { %v2483_v1 = vmul.f32 %v112_v0, %v99_v62 }
 0x18c   :  { %v116_v2 = vmul.f32 0.5, %v115_v63 }
 0x18d   :  { %2065 = vmatmul.msk.f32.vlgmr.msra.gmra.mxu2 %vm76_vm2, %v2483_v1 }
 0x18e   :  { %v117_v3 = vsub.f32 1.5, %v116_v2 }
 0x190   :  { %v118_v4 = vmul.f32 %v2224_v59, %v117_v3 }
 0x192   :  { %v122_v6 = vsel %vm121_vm8, %v2224_v59, %v118_v4 }
 0x193   :  { %v2487_v7 = vmul.f32 %v122_v6, %v100_v5 }
 0x195   :  { %2066 = vmatmul.msk.f32.gmra.mxu2 %vm76_vm2, %v2487_v7 }
 0x210   :  { %v2491_v8 = vpop.f32.mrf.mxu2 }
 0x211   :  { %188 = vrot.lane.b32.xlu1 %v2491_v8, %s2363_s11 }
 0x218   :  { %v2495_v9 = vpop.f32.mrf.mxu2 }
 0x219   :  { %320 = vrot.lane.b32.xlu1 %v2495_v9, %s2364_s12  ;;  %190 = vrot.lane.b32.xlu0 %v2495_v9, %s2363_s11  ;;  %v2525_v24 = vpack.i.bf16 %v2491_v8, %v2495_v9 }
 0x221   :  { %314 = vrot.lane.b32.xlu1 %v2491_v8, %s2365_s13 }
 0x283   :  { %v189_v11 = vpop.permute.xlu1 %188 }
 0x28b   :  { %v191_v10 = vpop.permute.xlu0 %190  ;;  %v321_v35 = vpop.permute.xlu1 %320 }
 0x28c   :  { %2067 = vmatpush.xpose.msk.msrb.mxu2 %vm192_vm9, %v191_v10 }
 0x290   :  { %2068 = vmatpush.xpose.msk.msrb.mxu2 %vm192_vm9, %v189_v11 }
 0x293   :  { %2069 = vmatmul.msk.f32.vlgmr.msrb.gmra.mxu2 %vm192_vm9, %v2491_v8  ;;  %v315_v41 = vpop.permute.xlu1 %314 }
 0x29b   :  { %2070 = vmatmul.msk.f32.gmra.mxu2 %vm192_vm9, %v2495_v9 }
 0x316   :  { %v218_v12 = vpop.f32.mrf.mxu2 }
 0x317   :  { %v224_v14 = vmul.f32 0.35355338, %v218_v12 }
 0x319   :  { %v226_v15 = vadd.f32 %v224_v14, %v2512_v13 }
 0x31b   :  { %v229_v16 = vsel %vm228_vm10, %v226_v15, -inf }
 0x31c   :  { %230 = vmax.xlane.f32.xlu2 %v229_v16 }
 0x31e   :  { %v221_v17 = vpop.f32.mrf.mxu2 }
 0x31f   :  { %v225_v19 = vmul.f32 0.35355338, %v221_v17 }
 0x321   :  { %v227_v21 = vadd.f32 %v225_v19, %v2519_v18 }
 0x323   :  { %v232_v23 = vsel %vm228_vm10, %v227_v21, -inf }
 0x324   :  { %233 = vmax.xlane.f32.xlu0 %v232_v23 }
 0x334   :  { %2176 = vrot.lane.b32.xlu2 %v2525_v24, %s2366_s18 }
 0x338   :  { %2181 = vrot.lane.b32.xlu0 %v2525_v24, %s2367_s19 }
 0x33c   :  { %318 = vrot.lane.b32.xlu2 %v2491_v8, %s2364_s12 }
 0x340   :  { %506 = vrot.lane.b32.xlu0 %v2495_v9, %s2368_s20 }
 0x344   :  { %316 = vrot.lane.b32.xlu2 %v2495_v9, %s2365_s13 }
 0x348   :  { %504 = vrot.lane.b32.xlu0 %v2491_v8, %s2368_s20 }
 0x350   :  { %502 = vrot.lane.b32.xlu0 %v2495_v9, %s2369_s21 }
 0x38f   :  { %v231_v25 = vpop.xlane.xlu2 %230 }
 0x390   :  { %v235_v26 = vsub.f32 %v226_v15, %v231_v25 }
 0x392   :  { %v237_v27 = vmul.f32 1.442695, %v235_v26 }
 0x394   :  { %2225 = vpow2.f32 %v237_v27 }
 0x397   :  { %v2177_v28 = vpop.permute.xlu2 %2176  ;;  %v234_v29 = vpop.xlane.xlu0 %233 }
 0x398   :  { %v236_v30 = vsub.f32 %v227_v21, %v234_v29  ;;  %v2178_v31 = vunpack.i.l.bf16 %v2177_v28  ;;  %v2179_v33 = vunpack.i.h.bf16 %v2177_v28 }
 0x39a   :  { %v239_v32 = vmul.f32 1.442695, %v236_v30  ;;  %273 = vmatpush.msra.mxu3 %v2178_v31  ;;  %v2226_v34 = vpop.eup %2225 }
 0x39b   :  { %v241_v56 = vsel %vm228_vm10, %v2226_v34, 0.0 }
 0x39c   :  { %2227 = vpow2.f32 %v239_v32  ;;  %274 = vmatpush.msra.mxu3 %v2179_v33 }
 0x39d   :  { %2071 = vmatmul.msk.f32.vlgmr.msra.gmra.mxu3 %vm228_vm10, %v2226_v34 }
 0x39e   :  { %2073 = vmatpush.xpose.msk.msrb.mxu3 %vm192_vm9, %v321_v35 }
 0x39f   :  { %v319_v36 = vpop.permute.xlu2 %318 }
 0x3a2   :  { %v2228_v37 = vpop.eup %2227  ;;  %2074 = vmatpush.xpose.msk.msrb.mxu3 %vm192_vm9, %v319_v36 }
 0x3a3   :  { %v244_v38 = vsel %vm228_vm10, %v2228_v37, 0.0 }
 0x3a4   :  { %245 = vadd.xlane.f32.xlu0 %v244_v38 }
 0x3a5   :  { %2072 = vmatmul.msk.f32.gmra.mxu3 %vm228_vm10, %v2228_v37 }
 0x3a6   :  { %492 = vmatpush.msra.mxu3 %v136_v57 }
 0x3a7   :  { %v317_v44 = vpop.permute.xlu2 %316 }
 0x3aa   :  { %v2182_v39 = vpop.permute.xlu0 %2181 }
 0x3ab   :  { %v2183_v40 = vunpack.i.l.bf16 %v2182_v39  ;;  %v2184_v42 = vunpack.i.h.bf16 %v2182_v39 }
 0x3ad   :  { %2075 = vmatmul.msk.f32.vlgmr.msrb.gmra.mxu3 %vm192_vm9, %v315_v41  ;;  %401 = vmatpush.msrb.mxu1 %v2183_v40  ;;  %v137_v41 = vld [vmem:[%s3076_s3 + $0x98] sm:$0xff] }
 0x3ae   :  { %463 = vmatpush.msra.mxu2 %v137_v41 }
 0x3af   :  { %402 = vmatpush.msrb.mxu1 %v2184_v42 }
 0x3b2   :  { %v507_v43 = vpop.permute.xlu0 %506 }
 0x3b3   :  { %2083 = vmatpush.xpose.msk.msra.mxu1 %vm192_vm9, %v507_v43 }
 0x3b5   :  { %2076 = vmatmul.msk.f32.gmra.mxu3 %vm192_vm9, %v317_v44 }
 0x3ba   :  { %v505_v45 = vpop.permute.xlu0 %504 }
 0x3bb   :  { %2084 = vmatpush.xpose.msk.msra.mxu1 %vm192_vm9, %v505_v45 }
 0x3c2   :  { %v503_v58 = vpop.permute.xlu0 %502 }
 0x417   :  { %v246_v62 = vpop.xlane.xlu0 %245 }
 0x418   :  { %v308_v31 = vand.u32 2147483648, %v246_v62  ;;  %vm302_vm0 = vweird.f32 %v246_v62  ;;  %v306_v33 = vand.u32 2147483647, %v246_v62 }
 0x41a   :  { %v309_v36 = vor.u32 1.1754944e-38, %v308_v31  ;;  %vm307_vm3 = vcmp.eq.f32.partialorder %v306_v33, 8.507059e+37 }
 0x420   :  { %v2550_v46 = vpop.f32.mrf.mxu3 }
 0x428   :  { %v2552_v47 = vpop.f32.mrf.mxu3 }
 0x430   :  { %v347_v48 = vpop.f32.mrf.mxu3 }
 0x431   :  { %v353_v49 = vmul.f32 0.35355338, %v347_v48 }
 0x433   :  { %v355_v50 = vadd.f32 %v353_v49, %v2512_v13 }
 0x435   :  { %v357_v51 = vsel %vm228_vm10, %v355_v50, -inf }
 0x436   :  { %358 = vmax.xlane.f32.xlu1 %v357_v51 }
 0x438   :  { %v350_v52 = vpop.f32.mrf.mxu3 }
 0x439   :  { %v354_v53 = vmul.f32 0.35355338, %v350_v52 }
 0x43b   :  { %v356_v54 = vadd.f32 %v354_v53, %v2519_v18 }
 0x43d   :  { %v360_v55 = vsel %vm228_vm10, %v356_v54, -inf }
 0x43e   :  { %361 = vmax.xlane.f32.xlu2 %v360_v55 }
 0x446   :  { %242 = vadd.xlane.f32.xlu2 %v241_v56 }
 0x44f   :  { %500 = vrot.lane.b32.xlu1 %v2491_v8, %s2369_s21 }
 0x457   :  { %663 = vrot.lane.b32.xlu1 %v2491_v8, %s2370_s22 }
 0x45e   :  { %665 = vrot.lane.b32.xlu2 %v2495_v9, %s2370_s22 }
 0x45f   :  { %659 = vrot.lane.b32.xlu1 %v2491_v8, %s2371_s23 }
 0x467   :  { %661 = vrot.lane.b32.xlu1 %v2495_v9, %s2371_s23 }
 0x4a9   :  { %v359_v59 = vpop.xlane.xlu1 %358 }
 0x4aa   :  { %v363_v60 = vsub.f32 %v355_v50, %v359_v59 }
 0x4ac   :  { %v365_v61 = vmul.f32 1.442695, %v363_v60 }
 0x4ae   :  { %2229 = vpow2.f32 %v365_v61 }
 0x4af   :  { %2231 = vrcp.f32 %v246_v62 }
 0x4b1   :  { %v362_v63 = vpop.xlane.xlu2 %361 }
 0x4b2   :  { %v364_v0 = vsub.f32 %v356_v54, %v362_v63 }
 0x4b4   :  { %v2230_v2 = vpop.eup %2229  ;;  %v367_v3 = vmul.f32 1.442695, %v364_v0 }
 0x4b5   :  { %2077 = vmatmul.msk.f32.vlgmr.msrb.gmra.mxu1 %vm228_vm10, %v2230_v2  ;;  %v369_v4 = vsel %vm228_vm10, %v2230_v2, 0.0  ;;  %v2232_v6 = vpop.eup %2231 }
 0x4b6   :  { %2233 = vpow2.f32 %v367_v3  ;;  %370 = vadd.xlane.f32.xlu2 %v369_v4  ;;  %v298_v9 = vmul.f32 %v2232_v6, %v246_v62  ;;  %vm303_vm14 = vweird.f32 %v2232_v6 }
 0x4b7   :  { %vm304_vm1 = vmor %vm302_vm0, %vm303_vm14 }
 0x4b8   :  { %v299_v12 = vsub.f32 1.0, %v298_v9 }
 0x4b9   :  { %v243_v5 = vpop.xlane.xlu2 %242 }
 0x4ba   :  { %2235 = vrcp.f32 %v243_v5  ;;  %v293_v19 = vand.u32 2147483648, %v243_v5  ;;  %v300_v21 = vmul.f32 %v2232_v6, %v299_v12  ;;  %v291_v25 = vand.u32 2147483647, %v243_v5 }
 0x4bb   :  { %vm287_vm12 = vweird.f32 %v243_v5 }
 0x4bc   :  { %v2234_v8 = vpop.eup %2233  ;;  %v294_v27 = vor.u32 1.1754944e-38, %v293_v19  ;;  %v301_v28 = vadd.f32 %v2232_v6, %v300_v21  ;;  %vm292_vm15 = vcmp.eq.f32.partialorder %v291_v25, 8.507059e+37 }
 0x4bd   :  { %2078 = vmatmul.msk.f32.gmra.mxu1 %vm228_vm10, %v2234_v8  ;;  %v372_v10 = vsel %vm228_vm10, %v2234_v8, 0.0 }
 0x4be   :  { %373 = vadd.xlane.f32.xlu1 %v372_v10  ;;  %v305_v35 = vsel %vm304_vm1, %v2232_v6, %v301_v28 }
 0x4bf   :  { %v310_v37 = vsel %vm307_vm3, %v309_v36, %v305_v35 }
 0x4c0   :  { %v2236_v11 = vpop.eup %2235  ;;  %v313_v38 = vmul.f32 %v310_v37, %v2552_v47 }
 0x4c1   :  { %v283_v14 = vmul.f32 %v2236_v11, %v243_v5  ;;  %v501_v15 = vpop.permute.xlu1 %500  ;;  %v666_v16 = vpop.permute.xlu2 %665  ;;  %vm288_vm11 = vweird.f32 %v2236_v11 }
 0x4c2   :  { %2091 = vmatpush.xpose.msk.msrb.mxu3 %vm192_vm9, %v666_v16  ;;  %vm289_vm13 = vmor %vm287_vm12, %vm288_vm11 }
 0x4c3   :  { %v284_v17 = vsub.f32 1.0, %v283_v14 }
 0x4c5   :  { %v285_v23 = vmul.f32 %v2236_v11, %v284_v17  ;;  %2085 = vmatmul.msk.f32.vlgmr.msra.gmra.mxu1 %vm192_vm9, %v501_v15 }
 0x4c7   :  { %v286_v26 = vadd.f32 %v2236_v11, %v285_v23 }
 0x4c9   :  { %v290_v29 = vsel %vm289_vm13, %v2236_v11, %v286_v26  ;;  %v664_v30 = vpop.permute.xlu1 %663 }
 0x4ca   :  { %v295_v32 = vsel %vm292_vm15, %v294_v27, %v290_v29  ;;  %2092 = vmatpush.xpose.msk.msrb.mxu3 %vm192_vm9, %v664_v30 }
 0x4cb   :  { %v312_v34 = vmul.f32 %v295_v32, %v2550_v46 }
 0x4cd   :  { %2081 = vmatmul.msk.f32.vlgmr.msra.gmra.mxu3 %vm192_vm9, %v312_v34  ;;  %2086 = vmatmul.msk.f32.gmra.mxu1 %vm192_vm9, %v503_v58 }
 0x4d1   :  { %v660_v39 = vpop.permute.xlu1 %659 }
 0x4d5   :  { %2082 = vmatmul.msk.f32.gmra.mxu3 %vm192_vm9, %v313_v38 }
 0x4d9   :  { %v662_v40 = vpop.permute.xlu1 %661 }
 0x4dd   :  { %2093 = vmatmul.msk.f32.vlgmr.msrb.gmra.mxu3 %vm192_vm9, %v660_v39 }
 0x4e5   :  { %2094 = vmatmul.msk.f32.gmra.mxu3 %vm192_vm9, %v662_v40 }
 0x529   :  { %v371_v42 = vpop.xlane.xlu2 %370 }
 0x52a   :  { %2237 = vrcp.f32 %v371_v42  ;;  %v421_v48 = vand.u32 2147483648, %v371_v42  ;;  %v419_v50 = vand.u32 2147483647, %v371_v42  ;;  %vm415_vm5 = vweird.f32 %v371_v42 }
 0x52c   :  { %v422_v53 = vor.u32 1.1754944e-38, %v421_v48  ;;  %vm420_vm7 = vcmp.eq.f32.partialorder %v419_v50, 8.507059e+37 }
 0x530   :  { %v2238_v43 = vpop.eup %2237 }
 0x531   :  { %v411_v44 = vmul.f32 %v2238_v43, %v371_v42  ;;  %v374_v45 = vpop.xlane.xlu1 %373  ;;  %vm416_vm4 = vweird.f32 %v2238_v43 }
 0x532   :  { %2239 = vrcp.f32 %v374_v45  ;;  %v404_v46 = vpop.f32.mrf.mxu1  ;;  %vm417_vm6 = vmor %vm415_vm5, %vm416_vm4  ;;  %v436_v60 = vand.u32 2147483648, %v374_v45  ;;  %v434_v62 = vand.u32 2147483647, %v374_v45  ;;  %vm430_vm11 = vweird.f32 %v374_v45 }
 0x533   :  { %v412_v47 = vsub.f32 1.0, %v411_v44 }
 0x534   :  { %v437_v0 = vor.u32 1.1754944e-38, %v436_v60  ;;  %vm435_vm13 = vcmp.eq.f32.partialorder %v434_v62, 8.507059e+37 }
 0x535   :  { %v413_v49 = vmul.f32 %v2238_v43, %v412_v47 }
 0x537   :  { %v414_v51 = vadd.f32 %v2238_v43, %v413_v49 }
 0x538   :  { %v2240_v52 = vpop.eup %2239 }
 0x539   :  { %v426_v54 = vmul.f32 %v2240_v52, %v374_v45  ;;  %v418_v55 = vsel %vm417_vm6, %v2238_v43, %v414_v51  ;;  %vm431_vm8 = vweird.f32 %v2240_v52 }
 0x53a   :  { %v423_v56 = vsel %vm420_vm7, %v422_v53, %v418_v55  ;;  %v407_v57 = vpop.f32.mrf.mxu1  ;;  %vm432_vm12 = vmor %vm430_vm11, %vm431_vm8 }
 0x53b   :  { %v427_v58 = vsub.f32 1.0, %v426_v54  ;;  %v440_v59 = vmul.f32 %v423_v56, %v404_v46 }
 0x53d   :  { %v428_v61 = vmul.f32 %v2240_v52, %v427_v58  ;;  %2079 = vmatmul.msk.f32.vlgmr.msra.gmra.mxu2 %vm192_vm9, %v440_v59 }
 0x53f   :  { %v429_v63 = vadd.f32 %v2240_v52, %v428_v61 }
 0x541   :  { %v433_v2 = vsel %vm432_vm12, %v2240_v52, %v429_v63 }
 0x542   :  { %v438_v3 = vsel %vm435_vm13, %v437_v0, %v433_v2  ;;  %v533_v4 = vpop.f32.mrf.mxu1 }
 0x543   :  { %v441_v5 = vmul.f32 %v438_v3, %v407_v57  ;;  %v539_v6 = vmul.f32 0.35355338, %v533_v4 }
 0x545   :  { %2080 = vmatmul.msk.f32.gmra.mxu2 %vm192_vm9, %v441_v5  ;;  %v541_v8 = vadd.f32 %v539_v6, %v2512_v13 }
 0x547   :  { %v543_v9 = vsel %vm228_vm10, %v541_v8, -inf }
 0x548   :  { %544 = vmax.xlane.f32.xlu0 %v543_v9 }
 0x54a   :  { %v536_v10 = vpop.f32.mrf.mxu1 }
 0x54b   :  { %v540_v11 = vmul.f32 0.35355338, %v536_v10 }
 0x54d   :  { %v542_v12 = vadd.f32 %v540_v11, %v2519_v18 }
 0x54f   :  { %v546_v14 = vsel %vm228_vm10, %v542_v12, -inf }
 0x550   :  { %v2595_v15 = vpop.f32.mrf.mxu3  ;;  %547 = vmax.xlane.f32.xlu0 %v546_v14 }
 0x558   :  { %v2597_v16 = vpop.f32.mrf.mxu3 }
 0x560   :  { %v692_v17 = vpop.f32.mrf.mxu3 }
 0x561   :  { %v698_v26 = vmul.f32 0.35355338, %v692_v17 }
 0x563   :  { %v700_v27 = vadd.f32 %v698_v26, %v2512_v13 }
 0x564   :  { %2186 = vrot.lane.b32.xlu0 %v2525_v24, %s2372_s28 }
 0x565   :  { %v702_v28 = vsel %vm228_vm10, %v700_v27, -inf }
 0x568   :  { %v695_v19 = vpop.f32.mrf.mxu3 }
 0x569   :  { %v699_v21 = vmul.f32 0.35355338, %v695_v19 }
 0x56b   :  { %v701_v23 = vadd.f32 %v699_v21, %v2519_v18 }
 0x56d   :  { %v705_v25 = vsel %vm228_vm10, %v701_v23, -inf }
 0x56e   :  { %706 = vmax.xlane.f32.xlu1 %v705_v25 }
 0x58e   :  { %703 = vmax.xlane.f32.xlu0 %v702_v28 }
 0x5bb   :  { %v545_v29 = vpop.xlane.xlu0 %544 }
 0x5bc   :  { %v549_v30 = vsub.f32 %v541_v8, %v545_v29 }
 0x5be   :  { %v551_v31 = vmul.f32 1.442695, %v549_v30 }
 0x5c0   :  { %2241 = vpow2.f32 %v551_v31  ;;  %v465_v56 = vpop.f32.mrf.mxu2 }
 0x5c1   :  { %v495_v31 = vadd.f32 %v2595_v15, %v465_v56 }
 0x5c3   :  { %v548_v32 = vpop.xlane.xlu0 %547 }
 0x5c4   :  { %v550_v33 = vsub.f32 %v542_v12, %v548_v32 }
 0x5c6   :  { %v2242_v34 = vpop.eup %2241  ;;  %v553_v35 = vmul.f32 1.442695, %v550_v33 }
 0x5c7   :  { %v555_v36 = vsel %vm228_vm10, %v2242_v34, 0.0 }
 0x5c8   :  { %2243 = vpow2.f32 %v553_v35  ;;  %556 = vadd.xlane.f32.xlu2 %v555_v36  ;;  %v2617_v62 = vpop.f32.mrf.mxu2 }
 0x5c9   :  { %v498_v56 = vadd.f32 %v2597_v16, %v2617_v62  ;;  %v134_v16 = vld [vmem:[%s3075_s2 + $0x38] sm:$0xff]  ;;  %v133_v62 = vld [vmem:[%s3075_s2 + $0x30] sm:$0xff] }
 0x5ce   :  { %v2244_v18 = vpop.eup %2243 }
 0x5cf   :  { %v558_v37 = vsel %vm228_vm10, %v2244_v18, 0.0 }
 0x5d0   :  { %559 = vadd.xlane.f32.xlu2 %v558_v37 }
 0x5d6   :  { %v2187_v13 = vpop.permute.xlu0 %2186 }
 0x5d7   :  { %v2188_v38 = vunpack.i.l.bf16 %v2187_v13  ;;  %v2189_v39 = vunpack.i.h.bf16 %v2187_v13 }
 0x5d9   :  { %587 = vmatpush.msrb.mxu2 %v2188_v38 }
 0x5db   :  { %588 = vmatpush.msrb.mxu2 %v2189_v39 }
 0x5dc   :  { %2087 = vmatmul.msk.f32.vlgmr.msrb.gmra.mxu2 %vm228_vm10, %v2242_v34 }
 0x5e1   :  { %v707_v40 = vpop.xlane.xlu1 %706 }
 0x5e2   :  { %v709_v43 = vsub.f32 %v701_v23, %v707_v40 }
 0x5e4   :  { %2088 = vmatmul.msk.f32.gmra.mxu2 %vm228_vm10, %v2244_v18  ;;  %v712_v45 = vmul.f32 1.442695, %v709_v43 }
 0x5e8   :  { %2191 = vrot.lane.b32.xlu2 %v2525_v24, %s2373_s29  ;;  %v138_v24 = vld [vmem:[%s3076_s3 + $0xa0] sm:$0xff] }
 0x5e9   :  { %649 = vmatpush.msra.mxu0 %v138_v24 }
 0x601   :  { %v704_v41 = vpop.xlane.xlu0 %703 }
 0x602   :  { %v708_v42 = vsub.f32 %v700_v27, %v704_v41  ;;  %v139_v27 = vld [vmem:[%s3076_s3 + $0xa8] sm:$0xff] }
 0x603   :  { %808 = vmatpush.msra.mxu2 %v139_v27 }
 0x604   :  { %v710_v44 = vmul.f32 1.442695, %v708_v42 }
 0x606   :  { %2245 = vpow2.f32 %v710_v44 }
 0x607   :  { %2247 = vpow2.f32 %v712_v45 }
 0x60c   :  { %v2246_v46 = vpop.eup %2245 }
 0x60d   :  { %v714_v47 = vsel %vm228_vm10, %v2246_v46, 0.0  ;;  %v2248_v48 = vpop.eup %2247 }
 0x60e   :  { %715 = vadd.xlane.f32.xlu1 %v714_v47  ;;  %v717_v49 = vsel %vm228_vm10, %v2248_v48, 0.0 }
 0x616   :  { %718 = vadd.xlane.f32.xlu1 %v717_v49 }
 0x63b   :  { %v557_v50 = vpop.xlane.xlu2 %556 }
 0x63c   :  { %2249 = vrcp.f32 %v557_v50  ;;  %v607_v2 = vand.u32 2147483648, %v557_v50  ;;  %vm601_vm15 = vweird.f32 %v557_v50  ;;  %v605_v3 = vand.u32 2147483647, %v557_v50 }
 0x63e   :  { %v608_v6 = vor.u32 1.1754944e-38, %v607_v2  ;;  %vm606_vm1 = vcmp.eq.f32.partialorder %v605_v3, 8.507059e+37 }
 0x642   :  { %v2250_v52 = vpop.eup %2249 }
 0x643   :  { %v560_v51 = vpop.xlane.xlu2 %559  ;;  %v597_v54 = vmul.f32 %v2250_v52, %v557_v50  ;;  %vm602_vm14 = vweird.f32 %v2250_v52 }
 0x644   :  { %2251 = vrcp.f32 %v560_v51  ;;  %vm603_vm0 = vmor %vm601_vm15, %vm602_vm14  ;;  %v622_v12 = vand.u32 2147483648, %v560_v51  ;;  %vm616_vm4 = vweird.f32 %v560_v51  ;;  %v620_v14 = vand.u32 2147483647, %v560_v51 }
 0x645   :  { %v598_v58 = vsub.f32 1.0, %v597_v54 }
 0x646   :  { %v623_v19 = vor.u32 1.1754944e-38, %v622_v12  ;;  %vm621_vm6 = vcmp.eq.f32.partialorder %v620_v14, 8.507059e+37 }
 0x647   :  { %v599_v61 = vmul.f32 %v2250_v52, %v598_v58 }
 0x649   :  { %v600_v0 = vadd.f32 %v2250_v52, %v599_v61 }
 0x64a   :  { %v2252_v59 = vpop.eup %2251 }
 0x64b   :  { %v2192_v53 = vpop.permute.xlu2 %2191  ;;  %v612_v60 = vmul.f32 %v2252_v59, %v560_v51  ;;  %v604_v4 = vsel %vm603_vm0, %v2250_v52, %v600_v0  ;;  %vm617_vm3 = vweird.f32 %v2252_v59 }
 0x64c   :  { %v2193_v55 = vunpack.i.l.bf16 %v2192_v53  ;;  %v2194_v57 = vunpack.i.h.bf16 %v2192_v53  ;;  %v609_v9 = vsel %vm606_vm1, %v608_v6, %v604_v4  ;;  %vm618_vm5 = vmor %vm616_vm4, %vm617_vm3  ;;  %v131_v4 = vld [vmem:[%s3075_s2 + $0x20] sm:$0xff] }
 0x64d   :  { %v613_v63 = vsub.f32 1.0, %v612_v60 }
 0x64e   :  { %746 = vmatpush.msrb.mxu0 %v2193_v55  ;;  %2157 = vmatpush.msrb.mxu1 %v2193_v55 }
 0x64f   :  { %v614_v5 = vmul.f32 %v2252_v59, %v613_v63 }
 0x650   :  { %747 = vmatpush.msrb.mxu0 %v2194_v57  ;;  %2158 = vmatpush.msrb.mxu1 %v2194_v57 }
 0x651   :  { %2096 = vmatmul.msk.f32.vlgmr.msrb.gmra.mxu1 %vm228_vm10, %v2248_v48  ;;  %v615_v11 = vadd.f32 %v2252_v59, %v614_v5 }
 0x653   :  { %v619_v17 = vsel %vm618_vm5, %v2252_v59, %v615_v11 }
 0x654   :  { %v624_v23 = vsel %vm621_vm6, %v623_v19, %v619_v17 }
 0x65f   :  { %v590_v8 = vpop.f32.mrf.mxu2 }
 0x660   :  { %v626_v10 = vmul.f32 %v609_v9, %v590_v8 }
 0x662   :  { %2089 = vmatmul.msk.f32.vlgmr.msra.gmra.mxu0 %vm192_vm9, %v626_v10 }
 0x663   :  { %887 = vmatpush.msra.mxu0 %v134_v16 }
 0x665   :  { %888 = vmatpush.msra.mxu0 %v133_v62 }
 0x667   :  { %v593_v21 = vpop.f32.mrf.mxu2 }
 0x668   :  { %v627_v25 = vmul.f32 %v624_v23, %v593_v21 }
 0x66a   :  { %2090 = vmatmul.msk.f32.gmra.mxu0 %vm192_vm9, %v627_v25 }
 0x672   :  { %2095 = vmatmul.msk.f32.vlgmr.msrb.gmra.mxu0 %vm228_vm10, %v2246_v46 }
 0x681   :  { %v716_v26 = vpop.xlane.xlu1 %715 }
 0x682   :  { %2253 = vrcp.f32 %v716_v26  ;;  %v766_v39 = vand.u32 2147483648, %v716_v26  ;;  %vm760_vm8 = vweird.f32 %v716_v26  ;;  %v764_v40 = vand.u32 2147483647, %v716_v26 }
 0x684   :  { %v767_v43 = vor.u32 1.1754944e-38, %v766_v39  ;;  %vm765_vm12 = vcmp.eq.f32.partialorder %v764_v40, 8.507059e+37 }
 0x688   :  { %v2254_v29 = vpop.eup %2253 }
 0x689   :  { %v719_v28 = vpop.xlane.xlu1 %718  ;;  %v756_v30 = vmul.f32 %v2254_v29, %v716_v26  ;;  %vm761_vm7 = vweird.f32 %v2254_v29 }
 0x68a   :  { %2255 = vrcp.f32 %v719_v28  ;;  %vm762_vm11 = vmor %vm760_vm8, %vm761_vm7  ;;  %v781_v47 = vand.u32 2147483648, %v719_v28  ;;  %vm775_vm14 = vweird.f32 %v719_v28  ;;  %v779_v48 = vand.u32 2147483647, %v719_v28 }
 0x68b   :  { %v757_v33 = vsub.f32 1.0, %v756_v30 }
 0x68c   :  { %v782_v50 = vor.u32 1.1754944e-38, %v781_v47  ;;  %vm780_vm0 = vcmp.eq.f32.partialorder %v779_v48, 8.507059e+37 }
 0x68d   :  { %v758_v18 = vmul.f32 %v2254_v29, %v757_v33 }
 0x68f   :  { %v759_v38 = vadd.f32 %v2254_v29, %v758_v18 }
 0x690   :  { %v2256_v35 = vpop.eup %2255 }
 0x691   :  { %v771_v36 = vmul.f32 %v2256_v35, %v719_v28  ;;  %v763_v42 = vsel %vm762_vm11, %v2254_v29, %v759_v38  ;;  %vm776_vm13 = vweird.f32 %v2256_v35 }
 0x692   :  { %v768_v15 = vsel %vm765_vm12, %v767_v43, %v763_v42  ;;  %vm777_vm15 = vmor %vm775_vm14, %vm776_vm13  ;;  %v155_v43 = vld [vmem:[%s3076_s3 + $0x128] sm:$0xff] }
 0x693   :  { %v772_v13 = vsub.f32 1.0, %v771_v36  ;;  %979 = vmatpush.msra.mxu3 %v155_v43 }
 0x695   :  { %v773_v41 = vmul.f32 %v2256_v35, %v772_v13 }
 0x697   :  { %v774_v45 = vadd.f32 %v2256_v35, %v773_v41 }
 0x699   :  { %v778_v49 = vsel %vm777_vm15, %v2256_v35, %v774_v45  ;;  %v153_v45 = vld [vmem:[%s3076_s3 + $0x118] sm:$0xff] }
 0x69a   :  { %v783_v51 = vsel %vm780_vm0, %v782_v50, %v778_v49  ;;  %v151_v49 = vld [vmem:[%s3076_s3 + $0x108] sm:$0xff]  ;;  %v150_v50 = vld [vmem:[%s3076_s3 + $0x100] sm:$0xff] }
 0x6ce   :  { %v752_v24 = vpop.f32.mrf.mxu1 }
 0x6cf   :  { %v786_v52 = vmul.f32 %v783_v51, %v752_v24 }
 0x6df   :  { %v651_v32 = vpop.f32.mrf.mxu0 }
 0x6e0   :  { %v657_v34 = vadd.f32 %v651_v32, %v495_v31 }
 0x6e7   :  { %v654_v37 = vpop.f32.mrf.mxu0 }
 0x6e8   :  { %v658_v59 = vadd.f32 %v654_v37, %v498_v56 }
 0x6ef   :  { %v749_v44 = vpop.f32.mrf.mxu0 }
 0x6f0   :  { %v785_v46 = vmul.f32 %v768_v15, %v749_v44  ;;  %v154_v44 = vld [vmem:[%s3076_s3 + $0x120] sm:$0xff] }
 0x6f1   :  { %980 = vmatpush.msra.mxu3 %v154_v44  ;;  %v2216_v15 = vld [vmem:[%s3075_s2 + $0x40] ss:$0 sm:$0xff] }
 0x6f2   :  { %2097 = vmatmul.msk.f32.vlgmr.msra.gmra.mxu2 %vm192_vm9, %v785_v46  ;;  %v152_v46 = vld [vmem:[%s3076_s3 + $0x110] sm:$0xff] }
 0x6f3   :  { %981 = vmatpush.msra.mxu3 %v153_v45 }
 0x6f5   :  { %982 = vmatpush.msra.mxu3 %v152_v46 }
 0x6f7   :  { %983 = vmatpush.msra.mxu3 %v151_v49 }
 0x6f9   :  { %984 = vmatpush.msra.mxu3 %v150_v50 }
 0x6fa   :  { %2098 = vmatmul.msk.f32.gmra.mxu2 %vm192_vm9, %v786_v52  ;;  %v149_v52 = vld [vmem:[%s3076_s3 + $0xf8] sm:$0xff] }
 0x6fb   :  { %985 = vmatpush.msra.mxu3 %v149_v52 }
 0x775   :  { %v810_v53 = vpop.f32.mrf.mxu2 }
 0x776   :  { %v816_v54 = vadd.f32 %v810_v53, %v657_v34 }
 0x778   :  { %v818_v55 = vadd.f32 %v816_v54, %v2483_v1  ;;  %v148_v54 = vld [vmem:[%s3076_s3 + $0xf0] sm:$0xff] }
 0x779   :  { %986 = vmatpush.msra.mxu3 %v148_v54 }
 0x77a   :  { %v820_v57 = vsel %vm76_vm2, %v818_v55, 0.0  ;;  %v826_v58 = vmul.f32 %v818_v55, %v818_v55 }
 0x77b   :  { %821 = vadd.xlane.f32.xlu1 %v820_v57 }
 0x77c   :  { %v828_v60 = vsel %vm76_vm2, %v826_v58, 0.0  ;;  %v147_v58 = vld [vmem:[%s3076_s3 + $0xe8] sm:$0xff] }
 0x77d   :  { %829 = vadd.xlane.f32.xlu2 %v828_v60  ;;  %v813_v61 = vpop.f32.mrf.mxu2  ;;  %987 = vmatpush.msra.mxu3 %v147_v58 }
 0x77e   :  { %v817_v63 = vadd.f32 %v813_v61, %v658_v59  ;;  %v146_v59 = vld [vmem:[%s3076_s3 + $0xe0] sm:$0xff]  ;;  %v145_v61 = vld [vmem:[%s3076_s3 + $0xd8] sm:$0xff] }
 0x77f   :  { %988 = vmatpush.msra.mxu3 %v146_v59 }
 0x780   :  { %v819_v0 = vadd.f32 %v817_v63, %v2487_v7  ;;  %v132_v7 = vld [vmem:[%s3075_s2 + $0x28] sm:$0xff] }
 0x781   :  { %889 = vmatpush.msra.mxu0 %v132_v7  ;;  %989 = vmatpush.msra.mxu3 %v145_v61  ;;  %v142_v7 = vld [vmem:[%s3076_s3 + $0xc0] sm:$0xff] }
 0x782   :  { %v823_v2 = vsel %vm76_vm2, %v819_v0, 0.0  ;;  %v827_v3 = vmul.f32 %v819_v0, %v819_v0 }
 0x783   :  { %824 = vadd.xlane.f32.xlu1 %v823_v2  ;;  %890 = vmatpush.msra.mxu0 %v131_v4 }
 0x784   :  { %v831_v1 = vsel %vm76_vm2, %v827_v3, 0.0 }
 0x785   :  { %832 = vadd.xlane.f32.xlu0 %v831_v1  ;;  %v143_v1 = vld [vmem:[%s3076_s3 + $0xc8] sm:$0xff] }
 0x7ee   :  { %v822_v5 = vpop.xlane.xlu1 %821 }
 0x7ef   :  { %v834_v6 = vmul.f32 0.03125, %v822_v5 }
 0x7f0   :  { %v830_v8 = vpop.xlane.xlu2 %829 }
 0x7f1   :  { %v838_v9 = vmul.f32 %v834_v6, %v834_v6  ;;  %v836_v10 = vmul.f32 0.03125, %v830_v8  ;;  %v842_v35 = vsub.f32 %v818_v55, %v834_v6  ;;  %v141_v6 = vld [vmem:[%s3076_s3 + $0xb8] sm:$0xff] }
 0x7f3   :  { %v840_v11 = vsub.f32 %v836_v10, %v838_v9  ;;  %v140_v10 = vld [vmem:[%s3076_s3 + $0xb0] sm:$0xff] }
 0x7f5   :  { %v844_v12 = vadd.f32 1e-05, %v840_v11 }
 0x7f6   :  { %v825_v14 = vpop.xlane.xlu1 %824 }
 0x7f7   :  { %2257 = vrsqrt.f32 %v844_v12  ;;  %v835_v17 = vmul.f32 0.03125, %v825_v14  ;;  %vm852_vm3 = vweird.f32 %v844_v12 }
 0x7f8   :  { %v833_v19 = vpop.xlane.xlu0 %832 }
 0x7f9   :  { %v839_v21 = vmul.f32 %v835_v17, %v835_v17  ;;  %v837_v23 = vmul.f32 0.03125, %v833_v19  ;;  %v843_v40 = vsub.f32 %v819_v0, %v835_v17  ;;  %v144_v0 = vld [vmem:[%s3076_s3 + $0xd0] sm:$0xff] }
 0x7fa   :  { %990 = vmatpush.msra.mxu3 %v144_v0 }
 0x7fb   :  { %v841_v25 = vsub.f32 %v837_v23, %v839_v21 }
 0x7fc   :  { %991 = vmatpush.msra.mxu3 %v143_v1 }
 0x7fd   :  { %v2258_v26 = vpop.eup %2257  ;;  %v845_v27 = vadd.f32 1e-05, %v841_v25 }
 0x7fe   :  { %v847_v28 = vmul.f32 %v2258_v26, %v844_v12  ;;  %vm853_vm1 = vweird.f32 %v2258_v26  ;;  %992 = vmatpush.msra.mxu3 %v142_v7 }
 0x7ff   :  { %2259 = vrsqrt.f32 %v845_v27  ;;  %vm854_vm4 = vmor %vm852_vm3, %vm853_vm1  ;;  %vm862_vm6 = vweird.f32 %v845_v27 }
 0x800   :  { %v848_v29 = vmul.f32 %v2258_v26, %v847_v28  ;;  %993 = vmatpush.msra.mxu3 %v141_v6 }
 0x802   :  { %v849_v30 = vmul.f32 0.5, %v848_v29  ;;  %994 = vmatpush.msra.mxu3 %v140_v10 }
 0x804   :  { %v850_v31 = vsub.f32 1.5, %v849_v30 }
 0x805   :  { %v2260_v32 = vpop.eup %2259 }
 0x806   :  { %v851_v33 = vmul.f32 %v2258_v26, %v850_v31  ;;  %v857_v34 = vmul.f32 %v2260_v32, %v845_v27  ;;  %vm863_vm5 = vweird.f32 %v2260_v32 }
 0x807   :  { %vm864_vm7 = vmor %vm862_vm6, %vm863_vm5 }
 0x808   :  { %v855_v36 = vsel %vm854_vm4, %v2258_v26, %v851_v33  ;;  %v858_v18 = vmul.f32 %v2260_v32, %v857_v34  ;;  %v1005_v34 = vld [vmem:[%s3075_s2 + $0x60] sm:$0xff] }
 0x809   :  { %v866_v37 = vmul.f32 %v855_v36, %v842_v35  ;;  %v1004_v35 = vld [vmem:[%s3075_s2 + $0x58] sm:$0xff]  ;;  %1050 = vmatpush.msra.mxu1 %v1005_v34  ;;  %v2772_v34 = vld [vmem:[%s3074_s1 + $0x8] sm:$0xff] }
 0x80a   :  { %v859_v13 = vmul.f32 0.5, %v858_v18 }
 0x80b   :  { %2099 = vmatmul.msk.f32.vlgmr.msra.gmra.mxu0 %vm76_vm2, %v866_v37  ;;  %1051 = vmatpush.msra.mxu1 %v1004_v35 }
 0x80c   :  { %v860_v38 = vsub.f32 1.5, %v859_v13 }
 0x80e   :  { %v861_v39 = vmul.f32 %v2260_v32, %v860_v38 }
 0x810   :  { %v865_v41 = vsel %vm864_vm7, %v2260_v32, %v861_v39 }
 0x811   :  { %v867_v42 = vmul.f32 %v865_v41, %v843_v40 }
 0x813   :  { %2100 = vmatmul.msk.f32.gmra.mxu0 %vm76_vm2, %v867_v42 }
 0x888   :  { %v892_v47 = vpop.f32.mrf.mxu0 }
 0x889   :  { %v2665_v48 = vadd.f32 %v2216_v15, %v892_v47 }
 0x88b   :  { %v2671_v24 = vmul.f32 0.70710677, %v2665_v48 }
 0x88d   :  { %v906_v51 = vand.u32 2147483647, %v2671_v24  ;;  %vm902_vm3 = vcmp.lt.f32.partialorder %v2671_v24, 0.0 }
 0x88f   :  { %v908_v53 = vmul.f32 0.3275911, %v906_v51  ;;  %v960_v21 = vsub.f32 0.0, %v906_v51 }
 0x890   :  { %v895_v55 = vpop.f32.mrf.mxu0 }
 0x891   :  { %v910_v56 = vadd.f32 1.0, %v908_v53  ;;  %v2683_v57 = vadd.f32 %v2216_v15, %v895_v55  ;;  %v962_v29 = vmul.f32 %v960_v21, %v906_v51 }
 0x893   :  { %2261 = vrcp.f32 %v910_v56  ;;  %v2692_v60 = vmul.f32 0.70710677, %v2683_v57  ;;  %v923_v5 = vand.u32 2147483648, %v910_v56  ;;  %v921_v9 = vand.u32 2147483647, %v910_v56 }
 0x894   :  { %vm917_vm11 = vweird.f32 %v910_v56  ;;  %v964_v37 = vmul.f32 1.442695, %v962_v29  ;;  %v2765_v29 = vld [vmem:[%s3074_s1] sm:$0xff] }
 0x895   :  { %v907_v63 = vand.u32 2147483647, %v2692_v60  ;;  %v924_v12 = vor.u32 1.1754944e-38, %v923_v5  ;;  %vm922_vm13 = vcmp.eq.f32.partialorder %v921_v9, 8.507059e+37  ;;  %vm903_vm4 = vcmp.lt.f32.partialorder %v2692_v60, 0.0 }
 0x896   :  { %v2217_v60 = vld [vmem:[%s3076_s3 + $0x130] ss:$0 sm:$0xff] }
 0x897   :  { %v909_v2 = vmul.f32 0.3275911, %v907_v63  ;;  %v961_v39 = vsub.f32 0.0, %v907_v63 }
 0x899   :  { %v2262_v3 = vpop.eup %2261  ;;  %v911_v62 = vadd.f32 1.0, %v909_v2  ;;  %v963_v15 = vmul.f32 %v961_v39, %v907_v63  ;;  %v898_v63 = vmul.f32 0.5, %v2665_v48  ;;  %v1003_v48 = vld [vmem:[%s3075_s2 + $0x50] sm:$0xff] }
 0x89a   :  { %v913_v16 = vmul.f32 %v2262_v3, %v910_v56  ;;  %vm918_vm8 = vweird.f32 %v2262_v3  ;;  %v904_v56 = vsel %vm902_vm3, -1.0, %v2362_v22  ;;  %1052 = vmatpush.msra.mxu1 %v1003_v48 }
 0x89b   :  { %2263 = vrcp.f32 %v911_v62  ;;  %vm919_vm12 = vmor %vm917_vm11, %vm918_vm8  ;;  %v938_v28 = vand.u32 2147483648, %v911_v62  ;;  %v936_v31 = vand.u32 2147483647, %v911_v62  ;;  %vm932_vm15 = vweird.f32 %v911_v62 }
 0x89c   :  { %v914_v4 = vsub.f32 1.0, %v913_v16  ;;  %2265 = vpow2.f32 %v964_v37  ;;  %v966_v50 = vmul.f32 1.442695, %v963_v15 }
 0x89d   :  { %v939_v18 = vor.u32 1.1754944e-38, %v938_v28  ;;  %vm937_vm1 = vcmp.eq.f32.partialorder %v936_v31, 8.507059e+37 }
 0x89e   :  { %v915_v8 = vmul.f32 %v2262_v3, %v914_v4  ;;  %2267 = vpow2.f32 %v966_v50  ;;  %v899_v4 = vmul.f32 0.5, %v2683_v57 }
 0x8a0   :  { %v916_v11 = vadd.f32 %v2262_v3, %v915_v8  ;;  %v1002_v8 = vld [vmem:[%s3075_s2 + $0x48] sm:$0xff] }
 0x8a1   :  { %v2264_v14 = vpop.eup %2263  ;;  %1053 = vmatpush.msra.mxu1 %v1002_v8 }
 0x8a2   :  { %v920_v17 = vsel %vm919_vm12, %v2262_v3, %v916_v11  ;;  %v928_v23 = vmul.f32 %v2264_v14, %v911_v62  ;;  %vm933_vm14 = vweird.f32 %v2264_v14  ;;  %v2266_v51 = vpop.eup %2265  ;;  %v905_v62 = vsel %vm903_vm4, -1.0, %v2362_v22 }
 0x8a3   :  { %v925_v19 = vsel %vm922_vm13, %v924_v12, %v920_v17  ;;  %vm934_vm0 = vmor %vm932_vm15, %vm933_vm14 }
 0x8a4   :  { %v942_v25 = vmul.f32 1.0614054, %v925_v19  ;;  %v929_v26 = vsub.f32 1.0, %v928_v23  ;;  %v2268_v3 = vpop.eup %2267 }
 0x8a6   :  { %v944_v27 = vadd.f32 -1.4531521, %v942_v25  ;;  %v930_v30 = vmul.f32 %v2264_v14, %v929_v26 }
 0x8a8   :  { %v946_v32 = vmul.f32 %v944_v27, %v925_v19  ;;  %v931_v33 = vadd.f32 %v2264_v14, %v930_v30 }
 0x8aa   :  { %v948_v36 = vadd.f32 1.4214138, %v946_v32  ;;  %v935_v13 = vsel %vm934_vm0, %v2264_v14, %v931_v33 }
 0x8ab   :  { %v940_v40 = vsel %vm937_vm1, %v939_v18, %v935_v13 }
 0x8ac   :  { %v950_v38 = vmul.f32 %v948_v36, %v925_v19  ;;  %v943_v41 = vmul.f32 1.0614054, %v940_v40 }
 0x8ae   :  { %v952_v42 = vadd.f32 -0.28449672, %v950_v38  ;;  %v945_v43 = vadd.f32 -1.4531521, %v943_v41 }
 0x8b0   :  { %v954_v44 = vmul.f32 %v952_v42, %v925_v19  ;;  %v947_v45 = vmul.f32 %v945_v43, %v940_v40 }
 0x8b2   :  { %v956_v46 = vadd.f32 0.2548296, %v954_v44  ;;  %v949_v47 = vadd.f32 1.4214138, %v947_v45 }
 0x8b4   :  { %v958_v49 = vmul.f32 %v956_v46, %v925_v19  ;;  %v951_v52 = vmul.f32 %v949_v47, %v940_v40 }
 0x8b6   :  { %v968_v53 = vmul.f32 %v2266_v51, %v958_v49  ;;  %v953_v54 = vadd.f32 -0.28449672, %v951_v52 }
 0x8b8   :  { %v970_v55 = vsub.f32 1.0, %v968_v53  ;;  %v955_v58 = vmul.f32 %v953_v54, %v940_v40 }
 0x8ba   :  { %v972_v59 = vmul.f32 %v970_v55, %v904_v56  ;;  %v957_v61 = vadd.f32 0.2548296, %v955_v58  ;;  %v1011_v56 = vld [vmem:[%s3076_s3 + $0x138] sm:$0xff] }
 0x8bb   :  { %1365 = vmatpush.msrb.mxu3 %v1011_v56 }
 0x8bc   :  { %v974_v0 = vadd.f32 1.0, %v972_v59  ;;  %v959_v2 = vmul.f32 %v957_v61, %v940_v40 }
 0x8be   :  { %v976_v1 = vmul.f32 %v974_v0, %v898_v63  ;;  %v969_v16 = vmul.f32 %v2268_v3, %v959_v2 }
 0x8c0   :  { %995 = vmatmul.f32.vlgmr.msra.gmra.mxu3 %v976_v1  ;;  %v971_v24 = vsub.f32 1.0, %v969_v16 }
 0x8c2   :  { %v973_v7 = vmul.f32 %v971_v24, %v905_v62 }
 0x8c4   :  { %v975_v5 = vadd.f32 1.0, %v973_v7 }
 0x8c6   :  { %v977_v6 = vmul.f32 %v975_v5, %v899_v4 }
 0x8c8   :  { %998 = vmatmul.f32.gmra.mxu3 %v977_v6 }
 0x943   :  { %v996_v9 = vpop.f32.mrf.mxu3 }
 0x944   :  { %v2734_v10 = vadd.f32 %v2217_v60, %v996_v9 }
 0x946   :  { %2101 = vmatmul.msk.f32.vlgmr.msra.gmra.mxu1 %vm76_vm2, %v2734_v10 }
 0x94b   :  { %v999_v57 = vpop.f32.mrf.mxu3 }
 0x94c   :  { %v2738_v11 = vadd.f32 %v2217_v60, %v999_v57 }
 0x94e   :  { %2102 = vmatmul.msk.f32.gmra.mxu1 %vm76_vm2, %v2738_v11 }
 0x9c3   :  { %v2742_v12 = vpop.f32.mrf.mxu1 }
 0x9c4   :  { %1063 = vrot.lane.b32.xlu0 %v2742_v12, %s2363_s11 }
 0x9cb   :  { %v2746_v14 = vpop.f32.mrf.mxu1 }
 0x9cc   :  { %1065 = vrot.lane.b32.xlu1 %v2746_v14, %s2363_s11  ;;  %v2752_v17 = vpack.i.bf16 %v2742_v12, %v2746_v14 }
 0x9ce   :  { %2196 = vrot.lane.b32.xlu2 %v2752_v17, %s2366_s18 }
 0xa28   :  { %v2197_v19 = vpop.permute.xlu2 %2196 }
 0xa29   :  { %v2198_v21 = vunpack.i.l.bf16 %v2197_v19  ;;  %v2199_v23 = vunpack.i.h.bf16 %v2197_v19 }
 0xa2b   :  { %1146 = vmatpush.msrb.mxu0 %v2198_v21 }
 0xa2d   :  { %1147 = vmatpush.msrb.mxu0 %v2199_v23 }
 0xa36   :  { %v1064_v26 = vpop.permute.xlu0 %1063 }
 0xa3e   :  { %v1066_v25 = vpop.permute.xlu1 %1065 }
 0xa3f   :  { %2103 = vmatpush.xpose.msk.msrb.mxu2 %vm192_vm9, %v1066_v25 }
 0xa43   :  { %2104 = vmatpush.xpose.msk.msrb.mxu2 %vm192_vm9, %v1064_v26 }
 0xa46   :  { %2105 = vmatmul.msk.f32.vlgmr.msrb.gmra.mxu2 %vm192_vm9, %v2742_v12 }
 0xa4e   :  { %2106 = vmatmul.msk.f32.gmra.mxu2 %vm192_vm9, %v2746_v14 }
 0xac9   :  { %v1092_v27 = vpop.f32.mrf.mxu2 }
 0xaca   :  { %v1098_v28 = vmul.f32 0.35355338, %v1092_v27 }
 0xacc   :  { %v1100_v30 = vadd.f32 %v2765_v29, %v1098_v28 }
 0xace   :  { %v1102_v31 = vsel %vm228_vm10, %v1100_v30, -inf }
 0xacf   :  { %1103 = vmax.xlane.f32.xlu1 %v1102_v31 }
 0xad1   :  { %v1095_v32 = vpop.f32.mrf.mxu2 }
 0xad2   :  { %v1099_v33 = vmul.f32 0.35355338, %v1095_v32 }
 0xad4   :  { %v1101_v35 = vadd.f32 %v2772_v34, %v1099_v33 }
 0xad6   :  { %v1105_v36 = vsel %vm228_vm10, %v1101_v35, -inf }
 0xad7   :  { %1106 = vmax.xlane.f32.xlu0 %v1105_v36 }
 0xae8   :  { %1191 = vrot.lane.b32.xlu1 %v2742_v12, %s2364_s12 }
 0xaeb   :  { %1193 = vrot.lane.b32.xlu0 %v2746_v14, %s2364_s12 }
 0xaf0   :  { %1379 = vrot.lane.b32.xlu1 %v2746_v14, %s2368_s20 }
 0xaf3   :  { %1187 = vrot.lane.b32.xlu0 %v2742_v12, %s2365_s13 }
 0xaf8   :  { %1532 = vrot.lane.b32.xlu1 %v2742_v12, %s2371_s23 }
 0xafb   :  { %1189 = vrot.lane.b32.xlu0 %v2746_v14, %s2365_s13 }
 0xb03   :  { %1536 = vrot.lane.b32.xlu0 %v2742_v12, %s2370_s22 }
 0xb0b   :  { %1377 = vrot.lane.b32.xlu0 %v2742_v12, %s2368_s20 }
 0xb13   :  { %1375 = vrot.lane.b32.xlu0 %v2746_v14, %s2369_s21 }
 0xb1b   :  { %2201 = vrot.lane.b32.xlu0 %v2752_v17, %s2367_s19 }
 0xb42   :  { %v1104_v18 = vpop.xlane.xlu1 %1103 }
 0xb43   :  { %v1108_v37 = vsub.f32 %v1100_v30, %v1104_v18 }
 0xb45   :  { %v1110_v13 = vmul.f32 1.442695, %v1108_v37 }
 0xb47   :  { %2269 = vpow2.f32 %v1110_v13 }
 0xb4a   :  { %v1107_v38 = vpop.xlane.xlu0 %1106 }
 0xb4b   :  { %v1109_v39 = vsub.f32 %v1101_v35, %v1107_v38 }
 0xb4d   :  { %v2270_v40 = vpop.eup %2269  ;;  %v1112_v41 = vmul.f32 1.442695, %v1109_v39 }
 0xb4e   :  { %2107 = vmatmul.msk.f32.vlgmr.msrb.gmra.mxu0 %vm228_vm10, %v2270_v40  ;;  %v1114_v42 = vsel %vm228_vm10, %v2270_v40, 0.0 }
 0xb4f   :  { %2271 = vpow2.f32 %v1112_v41  ;;  %1115 = vadd.xlane.f32.xlu2 %v1114_v42 }
 0xb55   :  { %v2272_v43 = vpop.eup %2271 }
 0xb56   :  { %2108 = vmatmul.msk.f32.gmra.mxu0 %vm228_vm10, %v2272_v43  ;;  %v1117_v44 = vsel %vm228_vm10, %v2272_v43, 0.0 }
 0xb57   :  { %1118 = vadd.xlane.f32.xlu1 %v1117_v44 }
 0xb5a   :  { %v1192_v15 = vpop.permute.xlu1 %1191 }
 0xb5d   :  { %v1194_v45 = vpop.permute.xlu0 %1193 }
 0xb5e   :  { %2109 = vmatpush.xpose.msk.msrb.mxu1 %vm192_vm9, %v1194_v45 }
 0xb62   :  { %v1380_v46 = vpop.permute.xlu1 %1379  ;;  %2110 = vmatpush.xpose.msk.msrb.mxu1 %vm192_vm9, %v1192_v15 }
 0xb65   :  { %v1188_v47 = vpop.permute.xlu0 %1187 }
 0xb66   :  { %2119 = vmatpush.xpose.msk.msra.mxu1 %vm192_vm9, %v1380_v46 }
 0xb67   :  { %2111 = vmatmul.msk.f32.vlgmr.msrb.gmra.mxu1 %vm192_vm9, %v1188_v47  ;;  %1538 = vrot.lane.b32.xlu2 %v2746_v14, %s2370_s22 }
 0xb6a   :  { %v1533_v58 = vpop.permute.xlu1 %1532 }
 0xb6d   :  { %v1190_v49 = vpop.permute.xlu0 %1189 }
 0xb6f   :  { %2112 = vmatmul.msk.f32.gmra.mxu1 %vm192_vm9, %v1190_v49  ;;  %1534 = vrot.lane.b32.xlu2 %v2746_v14, %s2371_s23 }
 0xb70   :  { %1373 = vrot.lane.b32.xlu1 %v2742_v12, %s2369_s21 }
 0xb75   :  { %v1537_v50 = vpop.permute.xlu0 %1536 }
 0xb7d   :  { %v1378_v51 = vpop.permute.xlu0 %1377 }
 0xb7e   :  { %2120 = vmatpush.xpose.msk.msra.mxu1 %vm192_vm9, %v1378_v51 }
 0xb85   :  { %v1376_v52 = vpop.permute.xlu0 %1375 }
 0xb8d   :  { %v2202_v53 = vpop.permute.xlu0 %2201 }
 0xb8e   :  { %v2203_v54 = vunpack.i.l.bf16 %v2202_v53  ;;  %v2204_v55 = vunpack.i.h.bf16 %v2202_v53 }
 0xb90   :  { %1274 = vmatpush.msra.mxu2 %v2203_v54 }
 0xb92   :  { %1275 = vmatpush.msra.mxu2 %v2204_v55 }
 0xbc2   :  { %v1116_v59 = vpop.xlane.xlu2 %1115 }
 0xbc3   :  { %2273 = vrcp.f32 %v1116_v59  ;;  %v1166_v1 = vand.u32 2147483648, %v1116_v59  ;;  %v1164_v24 = vand.u32 2147483647, %v1116_v59  ;;  %vm1160_vm6 = vweird.f32 %v1116_v59 }
 0xbc5   :  { %v1167_v5 = vor.u32 1.1754944e-38, %v1166_v1  ;;  %vm1165_vm8 = vcmp.eq.f32.partialorder %v1164_v24, 8.507059e+37 }
 0xbc9   :  { %v2274_v61 = vpop.eup %2273 }
 0xbca   :  { %v1156_v63 = vmul.f32 %v2274_v61, %v1116_v59  ;;  %v1539_v0 = vpop.permute.xlu2 %1538  ;;  %v1119_v2 = vpop.xlane.xlu1 %1118  ;;  %vm1161_vm5 = vweird.f32 %v2274_v61 }
 0xbcb   :  { %2275 = vrcp.f32 %v1119_v2  ;;  %2127 = vmatpush.xpose.msk.msra.mxu3 %vm192_vm9, %v1539_v0  ;;  %v1149_v4 = vpop.f32.mrf.mxu0  ;;  %vm1162_vm7 = vmor %vm1160_vm6, %vm1161_vm5  ;;  %v1181_v57 = vand.u32 2147483648, %v1119_v2  ;;  %v1179_v14 = vand.u32 2147483647, %v1119_v2  ;;  %vm1175_vm12 = vweird.f32 %v1119_v2 }
 0xbcc   :  { %v1157_v3 = vsub.f32 1.0, %v1156_v63 }
 0xbcd   :  { %v1182_v21 = vor.u32 1.1754944e-38, %v1181_v57  ;;  %vm1180_vm14 = vcmp.eq.f32.partialorder %v1179_v14, 8.507059e+37 }
 0xbce   :  { %v1158_v16 = vmul.f32 %v2274_v61, %v1157_v3 }
 0xbcf   :  { %2128 = vmatpush.xpose.msk.msra.mxu3 %vm192_vm9, %v1537_v50 }
 0xbd0   :  { %v1159_v62 = vadd.f32 %v2274_v61, %v1158_v16 }
 0xbd1   :  { %v2276_v7 = vpop.eup %2275 }
 0xbd2   :  { %v1171_v6 = vmul.f32 %v2276_v7, %v1119_v2  ;;  %v1163_v48 = vsel %vm1162_vm7, %v2274_v61, %v1159_v62  ;;  %vm1176_vm11 = vweird.f32 %v2276_v7  ;;  %v1535_v18 = vpop.permute.xlu2 %1534 }
 0xbd3   :  { %v1168_v8 = vsel %vm1165_vm8, %v1167_v5, %v1163_v48  ;;  %vm1177_vm13 = vmor %vm1175_vm12, %vm1176_vm11  ;;  %v1152_v25 = vpop.f32.mrf.mxu0 }
 0xbd4   :  { %v1172_v60 = vsub.f32 1.0, %v1171_v6  ;;  %v1185_v9 = vmul.f32 %v1168_v8, %v1149_v4 }
 0xbd6   :  { %v1173_v12 = vmul.f32 %v2276_v7, %v1172_v60  ;;  %2117 = vmatmul.msk.f32.vlgmr.msrb.gmra.mxu3 %vm192_vm9, %v1185_v9  ;;  %v1012_v9 = vld [vmem:[%s3076_s3 + $0x140] sm:$0xff] }
 0xbd7   :  { %1336 = vmatpush.msra.mxu0 %v1012_v9 }
 0xbd8   :  { %v1174_v19 = vadd.f32 %v2276_v7, %v1173_v12 }
 0xbda   :  { %v1178_v23 = vsel %vm1177_vm13, %v2276_v7, %v1174_v19 }
 0xbdb   :  { %v1183_v26 = vsel %vm1180_vm14, %v1182_v21, %v1178_v23 }
 0xbdc   :  { %v1186_v27 = vmul.f32 %v1183_v26, %v1152_v25 }
 0xbde   :  { %2118 = vmatmul.msk.f32.gmra.mxu3 %vm192_vm9, %v1186_v27 }
 0xbe2   :  { %v1374_v28 = vpop.permute.xlu1 %1373 }
 0xbe3   :  { %2121 = vmatmul.msk.f32.vlgmr.msra.gmra.mxu1 %vm192_vm9, %v1374_v28 }
 0xbe4   :  { %v1220_v30 = vpop.f32.mrf.mxu1 }
 0xbe5   :  { %v1226_v31 = vmul.f32 0.35355338, %v1220_v30 }
 0xbe6   :  { %2129 = vmatmul.msk.f32.vlgmr.msra.gmra.mxu3 %vm192_vm9, %v1533_v58 }
 0xbe7   :  { %v1228_v32 = vadd.f32 %v2765_v29, %v1226_v31 }
 0xbe9   :  { %v1230_v33 = vsel %vm228_vm10, %v1228_v32, -inf }
 0xbea   :  { %1231 = vmax.xlane.f32.xlu1 %v1230_v33 }
 0xbeb   :  { %2122 = vmatmul.msk.f32.gmra.mxu1 %vm192_vm9, %v1376_v52 }
 0xbec   :  { %v1223_v35 = vpop.f32.mrf.mxu1 }
 0xbed   :  { %v1227_v36 = vmul.f32 0.35355338, %v1223_v35 }
 0xbee   :  { %2130 = vmatmul.msk.f32.gmra.mxu3 %vm192_vm9, %v1535_v18 }
 0xbef   :  { %v1229_v37 = vadd.f32 %v2772_v34, %v1227_v36 }
 0xbf1   :  { %v1233_v13 = vsel %vm228_vm10, %v1229_v37, -inf }
 0xbf2   :  { %1234 = vmax.xlane.f32.xlu2 %v1233_v13 }
 0xc59   :  { %v2827_v38 = vpop.f32.mrf.mxu3 }
 0xc5d   :  { %v1232_v39 = vpop.xlane.xlu1 %1231 }
 0xc5e   :  { %v1236_v40 = vsub.f32 %v1228_v32, %v1232_v39 }
 0xc60   :  { %v1238_v41 = vmul.f32 1.442695, %v1236_v40  ;;  %v1406_v42 = vpop.f32.mrf.mxu1 }
 0xc61   :  { %v1412_v43 = vmul.f32 0.35355338, %v1406_v42  ;;  %v2829_v44 = vpop.f32.mrf.mxu3 }
 0xc62   :  { %2277 = vpow2.f32 %v1238_v41 }
 0xc63   :  { %v1414_v15 = vadd.f32 %v2765_v29, %v1412_v43 }
 0xc65   :  { %v1235_v45 = vpop.xlane.xlu2 %1234  ;;  %v1416_v47 = vsel %vm228_vm10, %v1414_v15, -inf }
 0xc66   :  { %v1237_v46 = vsub.f32 %v1229_v37, %v1235_v45  ;;  %1417 = vmax.xlane.f32.xlu0 %v1416_v47 }
 0xc68   :  { %v2278_v49 = vpop.eup %2277  ;;  %v1240_v50 = vmul.f32 1.442695, %v1237_v46  ;;  %v1409_v51 = vpop.f32.mrf.mxu1 }
 0xc69   :  { %2113 = vmatmul.msk.f32.vlgmr.msra.gmra.mxu2 %vm228_vm10, %v2278_v49  ;;  %v1413_v52 = vmul.f32 0.35355338, %v1409_v51  ;;  %v1565_v53 = vpop.f32.mrf.mxu3 }
 0xc6a   :  { %2279 = vpow2.f32 %v1240_v50  ;;  %v1571_v54 = vmul.f32 0.35355338, %v1565_v53 }
 0xc6b   :  { %v1415_v55 = vadd.f32 %v2772_v34, %v1413_v52 }
 0xc6c   :  { %v1573_v56 = vadd.f32 %v2765_v29, %v1571_v54  ;;  %v1242_v29 = vsel %vm228_vm10, %v2278_v49, 0.0 }
 0xc6d   :  { %v1419_v58 = vsel %vm228_vm10, %v1415_v55, -inf }
 0xc6e   :  { %1420 = vmax.xlane.f32.xlu2 %v1419_v58  ;;  %v1575_v59 = vsel %vm228_vm10, %v1573_v56, -inf }
 0xc6f   :  { %1576 = vmax.xlane.f32.xlu1 %v1575_v59 }
 0xc70   :  { %v2280_v61 = vpop.eup %2279 }
 0xc71   :  { %2114 = vmatmul.msk.f32.gmra.mxu2 %vm228_vm10, %v2280_v61  ;;  %v1568_v63 = vpop.f32.mrf.mxu3  ;;  %v1245_v1 = vsel %vm228_vm10, %v2280_v61, 0.0 }
 0xc72   :  { %v1572_v0 = vmul.f32 0.35355338, %v1568_v63 }
 0xc74   :  { %v1574_v2 = vadd.f32 %v2772_v34, %v1572_v0  ;;  %v1014_v0 = vld [vmem:[%s3076_s3 + $0x150] sm:$0xff] }
 0xc76   :  { %v1578_v3 = vsel %vm228_vm10, %v1574_v2, -inf }
 0xc77   :  { %1579 = vmax.xlane.f32.xlu2 %v1578_v3 }
 0xc7a   :  { %2211 = vrot.lane.b32.xlu0 %v2752_v17, %s2373_s29 }
 0xc7f   :  { %1243 = vadd.xlane.f32.xlu2 %v1242_v29  ;;  %v1013_v29 = vld [vmem:[%s3076_s3 + $0x148] sm:$0xff] }
 0xc80   :  { %1522 = vmatpush.msrb.mxu0 %v1013_v29 }
 0xc87   :  { %1246 = vadd.xlane.f32.xlu2 %v1245_v1 }
 0xc88   :  { %2206 = vrot.lane.b32.xlu1 %v2752_v17, %s2372_s28 }
 0xcd9   :  { %v1418_v16 = vpop.xlane.xlu0 %1417 }
 0xcda   :  { %v1422_v24 = vsub.f32 %v1414_v15, %v1418_v16 }
 0xcdc   :  { %v1424_v62 = vmul.f32 1.442695, %v1422_v24 }
 0xcde   :  { %2281 = vpow2.f32 %v1424_v62 }
 0xce1   :  { %v1421_v34 = vpop.xlane.xlu2 %1420 }
 0xce2   :  { %v1423_v7 = vsub.f32 %v1415_v55, %v1421_v34  ;;  %v1577_v4 = vpop.xlane.xlu1 %1576 }
 0xce3   :  { %v1581_v5 = vsub.f32 %v1573_v56, %v1577_v4 }
 0xce4   :  { %v2282_v6 = vpop.eup %2281  ;;  %v1426_v48 = vmul.f32 1.442695, %v1423_v7 }
 0xce5   :  { %v1583_v8 = vmul.f32 1.442695, %v1581_v5  ;;  %v1428_v60 = vsel %vm228_vm10, %v2282_v6, 0.0 }
 0xce6   :  { %2283 = vpow2.f32 %v1426_v48  ;;  %1429 = vadd.xlane.f32.xlu2 %v1428_v60 }
 0xce7   :  { %2285 = vpow2.f32 %v1583_v8 }
 0xcea   :  { %v1580_v17 = vpop.xlane.xlu2 %1579 }
 0xceb   :  { %v1582_v57 = vsub.f32 %v1574_v2, %v1580_v17 }
 0xcec   :  { %v2284_v12 = vpop.eup %2283  ;;  %v2212_v14 = vpop.permute.xlu0 %2211 }
 0xced   :  { %v2286_v19 = vpop.eup %2285  ;;  %v1585_v21 = vmul.f32 1.442695, %v1582_v57  ;;  %v2213_v23 = vunpack.i.l.bf16 %v2212_v14  ;;  %v1431_v25 = vsel %vm228_vm10, %v2284_v12, 0.0  ;;  %v2214_v27 = vunpack.i.h.bf16 %v2212_v14  ;;  %v1277_v15 = vpop.f32.mrf.mxu2 }
 0xcee   :  { %1432 = vadd.xlane.f32.xlu2 %v1431_v25  ;;  %v1587_v26 = vsel %vm228_vm10, %v2286_v19, 0.0 }
 0xcef   :  { %2287 = vpow2.f32 %v1585_v21  ;;  %1588 = vadd.xlane.f32.xlu1 %v1587_v26  ;;  %1619 = vmatpush.msrb.mxu1 %v2213_v23 }
 0xcf1   :  { %1620 = vmatpush.msrb.mxu1 %v2214_v27 }
 0xcf2   :  { %v1244_v28 = vpop.xlane.xlu2 %1243  ;;  %2131 = vmatmul.msk.f32.vlgmr.msrb.gmra.mxu1 %vm228_vm10, %v2286_v19 }
 0xcf3   :  { %2289 = vrcp.f32 %v1244_v28  ;;  %v1294_v13 = vand.u32 2147483648, %v1244_v28  ;;  %v1292_v41 = vand.u32 2147483647, %v1244_v28  ;;  %vm1288_vm0 = vweird.f32 %v1244_v28 }
 0xcf5   :  { %v2288_v30 = vpop.eup %2287  ;;  %v1295_v45 = vor.u32 1.1754944e-38, %v1294_v13  ;;  %vm1293_vm3 = vcmp.eq.f32.partialorder %v1292_v41, 8.507059e+37  ;;  %v1280_v59 = vpop.f32.mrf.mxu2 }
 0xcf6   :  { %v1590_v31 = vsel %vm228_vm10, %v2288_v30, 0.0 }
 0xcf7   :  { %1591 = vadd.xlane.f32.xlu0 %v1590_v31 }
 0xcf9   :  { %v2290_v32 = vpop.eup %2289 }
 0xcfa   :  { %v1284_v33 = vmul.f32 %v2290_v32, %v1244_v28  ;;  %v2207_v35 = vpop.permute.xlu1 %2206  ;;  %v1247_v36 = vpop.xlane.xlu2 %1246  ;;  %2132 = vmatmul.msk.f32.gmra.mxu1 %vm228_vm10, %v2288_v30  ;;  %vm1289_vm15 = vweird.f32 %v2290_v32 }
 0xcfb   :  { %v2208_v18 = vunpack.i.l.bf16 %v2207_v35  ;;  %2291 = vrcp.f32 %v1247_v36  ;;  %v2209_v39 = vunpack.i.h.bf16 %v2207_v35  ;;  %vm1290_vm1 = vmor %vm1288_vm0, %vm1289_vm15  ;;  %v1309_v52 = vand.u32 2147483648, %v1247_v36 }
 0xcfc   :  { %v1285_v37 = vsub.f32 1.0, %v1284_v33  ;;  %v1307_v54 = vand.u32 2147483647, %v1247_v36  ;;  %vm1303_vm5 = vweird.f32 %v1247_v36 }
 0xcfd   :  { %1460 = vmatpush.msrb.mxu2 %v2208_v18  ;;  %v1310_v56 = vor.u32 1.1754944e-38, %v1309_v52 }
 0xcfe   :  { %v1286_v40 = vmul.f32 %v2290_v32, %v1285_v37  ;;  %vm1308_vm7 = vcmp.eq.f32.partialorder %v1307_v54, 8.507059e+37 }
 0xcff   :  { %1461 = vmatpush.msrb.mxu2 %v2209_v39 }
 0xd00   :  { %v1287_v42 = vadd.f32 %v2290_v32, %v1286_v40  ;;  %2123 = vmatmul.msk.f32.vlgmr.msrb.gmra.mxu2 %vm228_vm10, %v2282_v6 }
 0xd01   :  { %v2292_v43 = vpop.eup %2291  ;;  %1681 = vmatpush.msra.mxu2 %v1014_v0 }
 0xd02   :  { %v1291_v46 = vsel %vm1290_vm1, %v2290_v32, %v1287_v42  ;;  %v1299_v47 = vmul.f32 %v2292_v43, %v1247_v36  ;;  %vm1304_vm4 = vweird.f32 %v2292_v43 }
 0xd03   :  { %v1296_v49 = vsel %vm1293_vm3, %v1295_v45, %v1291_v46  ;;  %vm1305_vm6 = vmor %vm1303_vm5, %vm1304_vm4 }
 0xd04   :  { %v1300_v50 = vsub.f32 1.0, %v1299_v47  ;;  %v1313_v51 = vmul.f32 %v1296_v49, %v1277_v15 }
 0xd06   :  { %v1301_v53 = vmul.f32 %v2292_v43, %v1300_v50  ;;  %2115 = vmatmul.msk.f32.vlgmr.msra.gmra.mxu0 %vm192_vm9, %v1313_v51 }
 0xd08   :  { %2124 = vmatmul.msk.f32.gmra.mxu2 %vm228_vm10, %v2284_v12  ;;  %v1302_v55 = vadd.f32 %v2292_v43, %v1301_v53 }
 0xd0a   :  { %v1306_v58 = vsel %vm1305_vm6, %v2292_v43, %v1302_v55 }
 0xd0b   :  { %v1311_v61 = vsel %vm1308_vm7, %v1310_v56, %v1306_v58 }
 0xd0c   :  { %v1314_v63 = vmul.f32 %v1311_v61, %v1280_v59 }
 0xd0e   :  { %2116 = vmatmul.msk.f32.gmra.mxu0 %vm192_vm9, %v1314_v63 }
 0xd59   :  { %v1430_v2 = vpop.xlane.xlu2 %1429 }
 0xd5a   :  { %v1480_v40 = vand.u32 2147483648, %v1430_v2  ;;  %vm1474_vm4 = vweird.f32 %v1430_v2  ;;  %v1478_v41 = vand.u32 2147483647, %v1430_v2 }
 0xd5c   :  { %v1481_v15 = vor.u32 1.1754944e-38, %v1480_v40  ;;  %vm1479_vm6 = vcmp.eq.f32.partialorder %v1478_v41, 8.507059e+37 }
 0xd61   :  { %v2866_v62 = vpop.xlane.xlu2 %1432 }
 0xd62   :  { %v1589_v3 = vpop.xlane.xlu1 %1588  ;;  %v1495_v50 = vand.u32 2147483648, %v2866_v62  ;;  %v1493_v51 = vand.u32 2147483647, %v2866_v62 }
 0xd63   :  { %2293 = vrcp.f32 %v1589_v3  ;;  %v1639_v4 = vand.u32 2147483648, %v1589_v3  ;;  %v1637_v6 = vand.u32 2147483647, %v1589_v3  ;;  %vm1633_vm11 = vweird.f32 %v1589_v3 }
 0xd64   :  { %2295 = vrcp.f32 %v1430_v2  ;;  %v1496_v53 = vor.u32 1.1754944e-38, %v1495_v50  ;;  %v2327_v50 = vld [vmem:[%s3076_s3 + $0x38] sm:$0xff] }
 0xd65   :  { %v1640_v17 = vor.u32 1.1754944e-38, %v1639_v4  ;;  %vm1638_vm13 = vcmp.eq.f32.partialorder %v1637_v6, 8.507059e+37 }
 0xd69   :  { %v2294_v1 = vpop.eup %2293 }
 0xd6a   :  { %v1629_v16 = vmul.f32 %v2294_v1, %v1589_v3  ;;  %v1592_v24 = vpop.xlane.xlu0 %1591  ;;  %v2296_v7 = vpop.eup %2295  ;;  %vm1634_vm8 = vweird.f32 %v2294_v1 }
 0xd6b   :  { %2297 = vrcp.f32 %v1592_v24  ;;  %v1470_v48 = vmul.f32 %v2296_v7, %v1430_v2  ;;  %vm1635_vm12 = vmor %vm1633_vm11, %vm1634_vm8  ;;  %v1654_v26 = vand.u32 2147483648, %v1592_v24  ;;  %v1652_v28 = vand.u32 2147483647, %v1592_v24 }
 0xd6c   :  { %v1630_v34 = vsub.f32 1.0, %v1629_v16  ;;  %2299 = vrcp.f32 %v2866_v62  ;;  %vm1648_vm15 = vweird.f32 %v1592_v24  ;;  %vm1475_vm3 = vweird.f32 %v2296_v7 }
 0xd6d   :  { %v1471_v19 = vsub.f32 1.0, %v1470_v48  ;;  %v1655_v33 = vor.u32 1.1754944e-38, %v1654_v26  ;;  %vm1653_vm1 = vcmp.eq.f32.partialorder %v1652_v28, 8.507059e+37  ;;  %vm1476_vm5 = vmor %vm1474_vm4, %vm1475_vm3  ;;  %vm1489_vm8 = vweird.f32 %v2866_v62  ;;  %v1009_v48 = vld [vmem:[%s3075_s2 + $0x80] sm:$0xff] }
 0xd6e   :  { %v1631_v5 = vmul.f32 %v2294_v1, %v1630_v34  ;;  %1760 = vmatpush.msra.mxu0 %v1009_v48  ;;  %v2322_v28 = vld [vmem:[%s3076_s3 + $0x60] sm:$0xff] }
 0xd6f   :  { %v1622_v9 = vpop.f32.mrf.mxu1  ;;  %v1472_v32 = vmul.f32 %v2296_v7, %v1471_v19 }
 0xd70   :  { %v1632_v8 = vadd.f32 %v2294_v1, %v1631_v5 }
 0xd71   :  { %v2298_v60 = vpop.eup %2297  ;;  %v1473_v39 = vadd.f32 %v2296_v7, %v1472_v32 }
 0xd72   :  { %v1644_v57 = vmul.f32 %v2298_v60, %v1592_v24  ;;  %v1636_v12 = vsel %vm1635_vm12, %v2294_v1, %v1632_v8  ;;  %v2300_v25 = vpop.eup %2299  ;;  %vm1649_vm14 = vweird.f32 %v2298_v60  ;;  %vm1494_vm12 = vcmp.eq.f32.partialorder %v1493_v51, 8.507059e+37 }
 0xd73   :  { %v1641_v14 = vsel %vm1638_vm13, %v1640_v17, %v1636_v12  ;;  %v1485_v30 = vmul.f32 %v2300_v25, %v2866_v62  ;;  %vm1650_vm0 = vmor %vm1648_vm15, %vm1649_vm14  ;;  %v1477_v42 = vsel %vm1476_vm5, %v2296_v7, %v1473_v39  ;;  %vm1490_vm7 = vweird.f32 %v2300_v25  ;;  %v2319_v17 = vld [vmem:[%s3076_s3 + $0x78] sm:$0xff] }
 0xd74   :  { %v1645_v21 = vsub.f32 1.0, %v1644_v57  ;;  %v1658_v23 = vmul.f32 %v1641_v14, %v1622_v9  ;;  %v1482_v46 = vsel %vm1479_vm6, %v1481_v15, %v1477_v42  ;;  %vm1491_vm11 = vmor %vm1489_vm8, %vm1490_vm7  ;;  %v1006_v9 = vld [vmem:[%s3075_s2 + $0x68] sm:$0xff]  ;;  %v2320_v14 = vld [vmem:[%s3076_s3 + $0x70] sm:$0xff] }
 0xd75   :  { %v1486_v37 = vsub.f32 1.0, %v1485_v30  ;;  %v2323_v30 = vld [vmem:[%s3076_s3 + $0x58] sm:$0xff]  ;;  %v2325_v42 = vld [vmem:[%s3076_s3 + $0x48] sm:$0xff] }
 0xd76   :  { %v1646_v27 = vmul.f32 %v2298_v60, %v1645_v21  ;;  %2133 = vmatmul.msk.f32.vlgmr.msra.gmra.mxu2 %vm192_vm9, %v1658_v23 }
 0xd77   :  { %v1625_v36 = vpop.f32.mrf.mxu1  ;;  %v1487_v43 = vmul.f32 %v2300_v25, %v1486_v37 }
 0xd78   :  { %v1647_v31 = vadd.f32 %v2298_v60, %v1646_v27 }
 0xd79   :  { %v1488_v49 = vadd.f32 %v2300_v25, %v1487_v43 }
 0xd7a   :  { %v1651_v35 = vsel %vm1650_vm0, %v2298_v60, %v1647_v31  ;;  %v1007_v60 = vld [vmem:[%s3075_s2 + $0x70] sm:$0xff] }
 0xd7b   :  { %v1656_v18 = vsel %vm1653_vm1, %v1655_v33, %v1651_v35  ;;  %v1492_v52 = vsel %vm1491_vm11, %v2300_v25, %v1488_v49  ;;  %v2321_v25 = vld [vmem:[%s3076_s3 + $0x68] sm:$0xff] }
 0xd7c   :  { %v1659_v13 = vmul.f32 %v1656_v18, %v1625_v36  ;;  %v1497_v55 = vsel %vm1494_vm12, %v1496_v53, %v1492_v52  ;;  %v2324_v18 = vld [vmem:[%s3076_s3 + $0x50] sm:$0xff] }
 0xd7e   :  { %2134 = vmatmul.msk.f32.gmra.mxu2 %vm192_vm9, %v1659_v13 }
 0xd83   :  { %v1463_v45 = vpop.f32.mrf.mxu2  ;;  %v1338_v58 = vpop.f32.mrf.mxu0 }
 0xd84   :  { %v1499_v47 = vmul.f32 %v1482_v46, %v1463_v45  ;;  %v1368_v61 = vadd.f32 %v2827_v38, %v1338_v58  ;;  %v2329_v58 = vld [vmem:[%s3076_s3 + $0x28] sm:$0xff] }
 0xd86   :  { %2125 = vmatmul.msk.f32.vlgmr.msrb.gmra.mxu0 %vm192_vm9, %v1499_v47  ;;  %v2326_v47 = vld [vmem:[%s3076_s3 + $0x40] sm:$0xff] }
 0xd8b   :  { %v1466_v54 = vpop.f32.mrf.mxu2  ;;  %v1341_v59 = vpop.f32.mrf.mxu0 }
 0xd8c   :  { %v1500_v56 = vmul.f32 %v1497_v55, %v1466_v54  ;;  %v1371_v24 = vadd.f32 %v2829_v44, %v1341_v59  ;;  %v2328_v54 = vld [vmem:[%s3076_s3 + $0x30] sm:$0xff] }
 0xd8e   :  { %2126 = vmatmul.msk.f32.gmra.mxu0 %vm192_vm9, %v1500_v56 }
 0xdf9   :  { %v1683_v2 = vpop.f32.mrf.mxu2 }
 0xe01   :  { %v1686_v7 = vpop.f32.mrf.mxu2 }
 0xe03   :  { %v1524_v63 = vpop.f32.mrf.mxu0 }
 0xe04   :  { %v1530_v0 = vadd.f32 %v1524_v63, %v1368_v61 }
 0xe06   :  { %v1689_v3 = vadd.f32 %v1683_v2, %v1530_v0  ;;  %v2330_v0 = vld [vmem:[%s3076_s3 + $0x20] sm:$0xff] }
 0xe08   :  { %v2879_v29 = vadd.f32 %v1689_v3, %v2734_v10  ;;  %v2331_v3 = vld [vmem:[%s3076_s3 + $0x18] sm:$0xff] }
 0xe0a   :  { %v1693_v1 = vsel %vm76_vm2, %v2879_v29, 0.0  ;;  %v1699_v34 = vmul.f32 %v2879_v29, %v2879_v29 }
 0xe0b   :  { %1694 = vadd.xlane.f32.xlu2 %v1693_v1  ;;  %v1527_v16 = vpop.f32.mrf.mxu0  ;;  %v2333_v1 = vld [vmem:[%s3076_s3 + $0x8] sm:$0xff] }
 0xe0c   :  { %v1531_v62 = vadd.f32 %v1527_v16, %v1371_v24  ;;  %v1701_v4 = vsel %vm76_vm2, %v1699_v34, 0.0  ;;  %v2334_v16 = vld [vmem:[%s3076_s3] sm:$0xff]  ;;  %v1030_v24 = vld [vmem:[%s3076_s3 + $0x1d0] sm:$0xff]  ;;  %v2218_v34 = vld [vmem:[%s3075_s2 + $0x88] ss:$0 sm:$0xff] }
 0xe0d   :  { %1852 = vmatpush.msrb.mxu3 %v1030_v24 }
 0xe0e   :  { %v1690_v38 = vadd.f32 %v1686_v7, %v1531_v62  ;;  %v1029_v62 = vld [vmem:[%s3076_s3 + $0x1c8] sm:$0xff]  ;;  %v1028_v7 = vld [vmem:[%s3076_s3 + $0x1c0] sm:$0xff] }
 0xe0f   :  { %1853 = vmatpush.msrb.mxu3 %v1029_v62 }
 0xe10   :  { %v2888_v5 = vadd.f32 %v1690_v38, %v2738_v11  ;;  %v1008_v11 = vld [vmem:[%s3075_s2 + $0x78] sm:$0xff] }
 0xe11   :  { %1761 = vmatpush.msra.mxu0 %v1008_v11  ;;  %1854 = vmatpush.msrb.mxu3 %v1028_v7  ;;  %v1027_v38 = vld [vmem:[%s3076_s3 + $0x1b8] sm:$0xff]  ;;  %v1024_v11 = vld [vmem:[%s3076_s3 + $0x1a0] sm:$0xff] }
 0xe12   :  { %v1696_v10 = vsel %vm76_vm2, %v2888_v5, 0.0  ;;  %v1700_v6 = vmul.f32 %v2888_v5, %v2888_v5 }
 0xe13   :  { %1702 = vadd.xlane.f32.xlu2 %v1701_v4  ;;  %1762 = vmatpush.msra.mxu0 %v1007_v60  ;;  %v1023_v60 = vld [vmem:[%s3076_s3 + $0x198] sm:$0xff] }
 0xe14   :  { %v1704_v44 = vsel %vm76_vm2, %v1700_v6, 0.0  ;;  %1855 = vmatpush.msrb.mxu3 %v1027_v38 }
 0xe15   :  { %1763 = vmatpush.msra.mxu0 %v1006_v9 }
 0xe17   :  { %2140 = vmatpush.xpose.msk.msrb.mxu0 %vm76_vm2, %v2319_v17  ;;  %v1022_v17 = vld [vmem:[%s3076_s3 + $0x190] sm:$0xff] }
 0xe1b   :  { %1697 = vadd.xlane.f32.xlu2 %v1696_v10  ;;  %2141 = vmatpush.xpose.msk.msrb.mxu0 %vm76_vm2, %v2320_v14  ;;  %v1026_v10 = vld [vmem:[%s3076_s3 + $0x1b0] sm:$0xff]  ;;  %v1019_v14 = vld [vmem:[%s3076_s3 + $0x178] sm:$0xff] }
 0xe1c   :  { %1856 = vmatpush.msrb.mxu3 %v1026_v10 }
 0xe1f   :  { %2142 = vmatpush.xpose.msk.msrb.mxu0 %vm76_vm2, %v2321_v25  ;;  %v1018_v25 = vld [vmem:[%s3076_s3 + $0x170] sm:$0xff] }
 0xe23   :  { %1705 = vadd.xlane.f32.xlu2 %v1704_v44  ;;  %2143 = vmatpush.xpose.msk.msrb.mxu0 %vm76_vm2, %v2322_v28  ;;  %v1025_v44 = vld [vmem:[%s3076_s3 + $0x1a8] sm:$0xff] }
 0xe24   :  { %1857 = vmatpush.msrb.mxu3 %v1025_v44  ;;  %v1017_v28 = vld [vmem:[%s3076_s3 + $0x168] sm:$0xff] }
 0xe26   :  { %1858 = vmatpush.msrb.mxu3 %v1024_v11 }
 0xe27   :  { %2144 = vmatpush.xpose.msk.msrb.mxu0 %vm76_vm2, %v2323_v30 }
 0xe28   :  { %1859 = vmatpush.msrb.mxu3 %v1023_v60 }
 0xe2a   :  { %1860 = vmatpush.msrb.mxu3 %v1022_v17 }
 0xe2b   :  { %2145 = vmatpush.xpose.msk.msrb.mxu0 %vm76_vm2, %v2324_v18  ;;  %v1015_v18 = vld [vmem:[%s3076_s3 + $0x158] sm:$0xff] }
 0xe2f   :  { %2146 = vmatpush.xpose.msk.msrb.mxu0 %vm76_vm2, %v2325_v42 }
 0xe33   :  { %2147 = vmatpush.xpose.msk.msrb.mxu0 %vm76_vm2, %v2326_v47 }
 0xe37   :  { %2148 = vmatpush.xpose.msk.msrb.mxu0 %vm76_vm2, %v2327_v50 }
 0xe3b   :  { %2149 = vmatpush.xpose.msk.msrb.mxu0 %vm76_vm2, %v2328_v54 }
 0xe3f   :  { %2150 = vmatpush.xpose.msk.msrb.mxu0 %vm76_vm2, %v2329_v58 }
 0xe43   :  { %2151 = vmatpush.xpose.msk.msrb.mxu0 %vm76_vm2, %v2330_v0  ;;  %v20_v0 = vld [vmem:[%s3073_s0 + $0x10] sm:$0xff] }
 0xe44   :  { %1876 = vperm.xlu1 %2215, %v20_v0  }
 0xe47   :  { %2152 = vmatpush.xpose.msk.msrb.mxu0 %vm76_vm2, %v2331_v3 }
 0xe7e   :  { %v1695_v8 = vpop.xlane.xlu2 %1694 }
 0xe7f   :  { %v1707_v57 = vmul.f32 0.03125, %v1695_v8 }
 0xe81   :  { %v1711_v19 = vmul.f32 %v1707_v57, %v1707_v57  ;;  %v1715_v45 = vsub.f32 %v2879_v29, %v1707_v57  ;;  %v2332_v29 = vld [vmem:[%s3076_s3 + $0x10] sm:$0xff]  ;;  %v1021_v57 = vld [vmem:[%s3076_s3 + $0x188] sm:$0xff] }
 0xe82   :  { %2153 = vmatpush.xpose.msk.msrb.mxu0 %vm76_vm2, %v2332_v29  ;;  %1861 = vmatpush.msrb.mxu3 %v1021_v57 }
 0xe86   :  { %v1703_v12 = vpop.xlane.xlu2 %1702  ;;  %2154 = vmatpush.xpose.msk.msrb.mxu0 %vm76_vm2, %v2333_v1 }
 0xe87   :  { %v1709_v21 = vmul.f32 0.03125, %v1703_v12  ;;  %v1020_v12 = vld [vmem:[%s3076_s3 + $0x180] sm:$0xff] }
 0xe88   :  { %1862 = vmatpush.msrb.mxu3 %v1020_v12 }
 0xe89   :  { %v1713_v23 = vsub.f32 %v1709_v21, %v1711_v19 }
 0xe8a   :  { %2155 = vmatpush.xpose.msk.msrb.mxu0 %vm76_vm2, %v2334_v16  ;;  %1863 = vmatpush.msrb.mxu3 %v1019_v14 }
 0xe8b   :  { %v1717_v26 = vadd.f32 1e-05, %v1713_v23 }
 0xe8c   :  { %1864 = vmatpush.msrb.mxu3 %v1018_v25 }
 0xe8d   :  { %2301 = vrsqrt.f32 %v1717_v26  ;;  %vm1725_vm13 = vweird.f32 %v1717_v26 }
 0xe8e   :  { %v1698_v27 = vpop.xlane.xlu2 %1697  ;;  %1865 = vmatpush.msrb.mxu3 %v1017_v28 }
 0xe8f   :  { %v1708_v32 = vmul.f32 0.03125, %v1698_v27 }
 0xe91   :  { %v1712_v37 = vmul.f32 %v1708_v32, %v1708_v32  ;;  %v1716_v61 = vsub.f32 %v2888_v5, %v1708_v32 }
 0xe93   :  { %v2302_v31 = vpop.eup %2301 }
 0xe94   :  { %v1720_v33 = vmul.f32 %v2302_v31, %v1717_v26  ;;  %vm1726_vm9 = vweird.f32 %v2302_v31 }
 0xe95   :  { %vm1727_vm14 = vmor %vm1725_vm13, %vm1726_vm9 }
 0xe96   :  { %v1721_v35 = vmul.f32 %v2302_v31, %v1720_v33  ;;  %v1706_v36 = vpop.xlane.xlu2 %1705  ;;  %v1016_v33 = vld [vmem:[%s3076_s3 + $0x160] sm:$0xff] }
 0xe97   :  { %v1710_v13 = vmul.f32 0.03125, %v1706_v36  ;;  %1866 = vmatpush.msrb.mxu3 %v1016_v33 }
 0xe98   :  { %v1722_v39 = vmul.f32 0.5, %v1721_v35 }
 0xe99   :  { %v1714_v40 = vsub.f32 %v1710_v13, %v1712_v37  ;;  %1867 = vmatpush.msrb.mxu3 %v1015_v18 }
 0xe9a   :  { %v1723_v41 = vsub.f32 1.5, %v1722_v39 }
 0xe9b   :  { %v1718_v43 = vadd.f32 1e-05, %v1714_v40 }
 0xe9c   :  { %v1724_v15 = vmul.f32 %v2302_v31, %v1723_v41 }
 0xe9d   :  { %2303 = vrsqrt.f32 %v1718_v43  ;;  %vm1735_vm0 = vweird.f32 %v1718_v43 }
 0xe9e   :  { %v1728_v46 = vsel %vm1727_vm14, %v2302_v31, %v1724_v15 }
 0xe9f   :  { %v1739_v49 = vmul.f32 %v1728_v46, %v1715_v45 }
 0xea1   :  { %2135 = vmatmul.msk.f32.vlgmr.msra.gmra.mxu0 %vm76_vm2, %v1739_v49 }
 0xea3   :  { %v2304_v51 = vpop.eup %2303 }
 0xea4   :  { %v1730_v52 = vmul.f32 %v2304_v51, %v1718_v43  ;;  %vm1736_vm15 = vweird.f32 %v2304_v51 }
 0xea5   :  { %vm1737_vm1 = vmor %vm1735_vm0, %vm1736_vm15 }
 0xea6   :  { %v1731_v53 = vmul.f32 %v2304_v51, %v1730_v52 }
 0xea8   :  { %v1732_v55 = vmul.f32 0.5, %v1731_v53 }
 0xeaa   :  { %v1733_v56 = vsub.f32 1.5, %v1732_v55 }
 0xeac   :  { %v1734_v59 = vmul.f32 %v2304_v51, %v1733_v56 }
 0xeae   :  { %v1738_v63 = vsel %vm1737_vm1, %v2304_v51, %v1734_v59 }
 0xeaf   :  { %v1740_v2 = vmul.f32 %v1738_v63, %v1716_v61 }
 0xeb1   :  { %2136 = vmatmul.msk.f32.gmra.mxu0 %vm76_vm2, %v1740_v2 }
 0xf1e   :  { %v1765_v4 = vpop.f32.mrf.mxu0 }
 0xf1f   :  { %v2990_v5 = vadd.f32 %v2218_v34, %v1765_v4 }
 0xf21   :  { %v2996_v6 = vmul.f32 0.70710677, %v2990_v5 }
 0xf23   :  { %v1779_v48 = vand.u32 2147483647, %v2996_v6  ;;  %vm1775_vm9 = vcmp.lt.f32.partialorder %v2996_v6, 0.0 }
 0xf25   :  { %v1781_v8 = vmul.f32 0.3275911, %v1779_v48  ;;  %v1833_v43 = vsub.f32 0.0, %v1779_v48 }
 0xf27   :  { %v1783_v9 = vadd.f32 1.0, %v1781_v8  ;;  %v1835_v46 = vmul.f32 %v1833_v43, %v1779_v48  ;;  %v1777_v48 = vsel %vm1775_vm9, -1.0, %v2362_v22  ;;  %v1904_v43 = vld [vmem:[%s3076_s3 + $0x1e0] sm:$0xff] }
 0xf29   :  { %2305 = vrcp.f32 %v1783_v9  ;;  %v1796_v31 = vand.u32 2147483648, %v1783_v9  ;;  %v1794_v36 = vand.u32 2147483647, %v1783_v9  ;;  %vm1790_vm4 = vweird.f32 %v1783_v9 }
 0xf2a   :  { %v1837_v52 = vmul.f32 1.442695, %v1835_v46 }
 0xf2b   :  { %v1797_v39 = vor.u32 1.1754944e-38, %v1796_v31  ;;  %vm1795_vm6 = vcmp.eq.f32.partialorder %v1794_v36, 8.507059e+37  ;;  %v1906_v36 = vld [vmem:[%s3076_s3 + $0x1f0] sm:$0xff] }
 0xf2e   :  { %v1768_v19 = vpop.f32.mrf.mxu0 }
 0xf2f   :  { %v2306_v21 = vpop.eup %2305  ;;  %v3020_v23 = vadd.f32 %v2218_v34, %v1768_v19 }
 0xf30   :  { %v1786_v26 = vmul.f32 %v2306_v21, %v1783_v9  ;;  %vm1791_vm3 = vweird.f32 %v2306_v21  ;;  %v1771_v9 = vmul.f32 0.5, %v2990_v5 }
 0xf31   :  { %v3026_v27 = vmul.f32 0.70710677, %v3020_v23  ;;  %vm1792_vm5 = vmor %vm1790_vm4, %vm1791_vm3 }
 0xf32   :  { %v1787_v30 = vsub.f32 1.0, %v1786_v26 }
 0xf33   :  { %v1780_v32 = vand.u32 2147483647, %v3026_v27  ;;  %vm1776_vm13 = vcmp.lt.f32.partialorder %v3026_v27, 0.0  ;;  %v1905_v27 = vld [vmem:[%s3076_s3 + $0x1e8] sm:$0xff] }
 0xf34   :  { %v1788_v35 = vmul.f32 %v2306_v21, %v1787_v30  ;;  %v1778_v30 = vsel %vm1776_vm13, -1.0, %v2362_v22 }
 0xf35   :  { %v1782_v37 = vmul.f32 0.3275911, %v1780_v32  ;;  %v1834_v1 = vsub.f32 0.0, %v1780_v32 }
 0xf36   :  { %v1789_v13 = vadd.f32 %v2306_v21, %v1788_v35  ;;  %v1907_v35 = vld [vmem:[%s3076_s3 + $0x1f8] sm:$0xff] }
 0xf37   :  { %v1784_v40 = vadd.f32 1.0, %v1782_v37  ;;  %v1836_v4 = vmul.f32 %v1834_v1, %v1780_v32  ;;  %v1772_v32 = vmul.f32 0.5, %v3020_v23  ;;  %1925 = vmatpush.msrb.mxu2 %v1907_v35  ;;  %v1877_v23 = vpop.permute.xlu1 %1876  ;;  %v2219_v37 = vld [vmem:[%s3076_s3 + $0x1d8] ss:$0 sm:$0xff] }
 0xf38   :  { %v1793_v41 = vsel %vm1792_vm5, %v2306_v21, %v1789_v13  ;;  %vm1878_vm14 = vcmp.eq.s32.totalorder %v1877_v23, %v2455_v20  ;;  %v2220_v20 = vld [vmem:[%s3076_s3 + $0x200] ss:$0 sm:$0xff]  ;;  %s2375_s3 = smov [#allocation2]  }
 0xf39   :  { %v1798_v42 = vsel %vm1795_vm6, %v1797_v39, %v1793_v41  ;;  %2307 = vrcp.f32 %v1784_v40  ;;  %v1811_v55 = vand.u32 2147483648, %v1784_v40  ;;  %v1809_v59 = vand.u32 2147483647, %v1784_v40  ;;  %1926 = vmatpush.msrb.mxu2 %v1906_v36  ;;  %s2050_s30 = sshll.u32 %s2375_s3, 4  ;;  %s2051_s30 = int_to_ptr.vmem [resolvable:$true] %s2050_s30 }
 0xf3a   :  { %v1815_v15 = vmul.f32 1.0614054, %v1798_v42  ;;  %2309 = vpow2.f32 %v1837_v52  ;;  %vm1805_vm8 = vweird.f32 %v1784_v40  ;;  %v1839_v60 = vmul.f32 1.442695, %v1836_v4 }
 0xf3b   :  { %v1812_v2 = vor.u32 1.1754944e-38, %v1811_v55  ;;  %vm1810_vm12 = vcmp.eq.f32.partialorder %v1809_v59, 8.507059e+37  ;;  %1927 = vmatpush.msrb.mxu2 %v1905_v27  ;;  %v2374_v41 = vmov 0.0  }
 0xf3c   :  { %v1817_v45 = vadd.f32 -1.4531521, %v1815_v15  ;;  %2311 = vpow2.f32 %v1839_v60 }
 0xf3d   :  { %1928 = vmatpush.msrb.mxu2 %v1904_v43 }
 0xf3e   :  { %v1819_v47 = vmul.f32 %v1817_v45, %v1798_v42 }
 0xf3f   :  { %v2308_v49 = vpop.eup %2307 }
 0xf40   :  { %v1821_v50 = vadd.f32 1.4214138, %v1819_v47  ;;  %v1801_v51 = vmul.f32 %v2308_v49, %v1784_v40  ;;  %vm1806_vm7 = vweird.f32 %v2308_v49  ;;  %v2310_v34 = vpop.eup %2309 }
 0xf41   :  { %vm1807_vm11 = vmor %vm1805_vm8, %vm1806_vm7 }
 0xf42   :  { %v1823_v53 = vmul.f32 %v1821_v50, %v1798_v42  ;;  %v1802_v54 = vsub.f32 1.0, %v1801_v51  ;;  %v2312_v25 = vpop.eup %2311 }
 0xf44   :  { %v1825_v56 = vadd.f32 -0.28449672, %v1823_v53  ;;  %v1803_v58 = vmul.f32 %v2308_v49, %v1802_v54 }
 0xf46   :  { %v1827_v61 = vmul.f32 %v1825_v56, %v1798_v42  ;;  %v1804_v63 = vadd.f32 %v2308_v49, %v1803_v58 }
 0xf48   :  { %v1829_v3 = vadd.f32 0.2548296, %v1827_v61  ;;  %v1808_v29 = vsel %vm1807_vm11, %v2308_v49, %v1804_v63 }
 0xf49   :  { %v1813_v16 = vsel %vm1810_vm12, %v1812_v2, %v1808_v29 }
 0xf4a   :  { %v1831_v24 = vmul.f32 %v1829_v3, %v1798_v42  ;;  %v1816_v62 = vmul.f32 1.0614054, %v1813_v16  ;;  %v2137_v42 = vsel %vm1878_vm14, 1.0, %v2374_v41 }
 0xf4c   :  { %v1841_v7 = vmul.f32 %v2310_v34, %v1831_v24  ;;  %v1818_v38 = vadd.f32 -1.4531521, %v1816_v62 }
 0xf4e   :  { %v1843_v10 = vsub.f32 1.0, %v1841_v7  ;;  %v1820_v44 = vmul.f32 %v1818_v38, %v1813_v16 }
 0xf50   :  { %v1845_v11 = vmul.f32 %v1843_v10, %v1777_v48  ;;  %v1822_v8 = vadd.f32 1.4214138, %v1820_v44 }
 0xf52   :  { %v1847_v17 = vadd.f32 1.0, %v1845_v11  ;;  %v1824_v57 = vmul.f32 %v1822_v8, %v1813_v16 }
 0xf54   :  { %v1849_v12 = vmul.f32 %v1847_v17, %v1771_v9  ;;  %v1826_v14 = vadd.f32 -0.28449672, %v1824_v57 }
 0xf56   :  { %1868 = vmatmul.f32.vlgmr.msrb.gmra.mxu3 %v1849_v12  ;;  %v1828_v19 = vmul.f32 %v1826_v14, %v1813_v16 }
 0xf58   :  { %v1830_v6 = vadd.f32 0.2548296, %v1828_v19 }
 0xf5a   :  { %v1832_v21 = vmul.f32 %v1830_v6, %v1813_v16 }
 0xf5c   :  { %v1842_v26 = vmul.f32 %v2312_v25, %v1832_v21 }
 0xf5e   :  { %v1844_v28 = vsub.f32 1.0, %v1842_v26 }
 0xf60   :  { %v1846_v31 = vmul.f32 %v1844_v28, %v1778_v30 }
 0xf62   :  { %v1848_v5 = vadd.f32 1.0, %v1846_v31 }
 0xf64   :  { %v1850_v33 = vmul.f32 %v1848_v5, %v1772_v32 }
 0xf66   :  { %1871 = vmatmul.f32.gmra.mxu3 %v1850_v33 }
 0xfd9   :  { %v1869_v18 = vpop.f32.mrf.mxu3 }
 0xfda   :  { %v1870_v40 = vadd.f32 %v2219_v37, %v1869_v18 }
 0xfe9   :  { %v1872_v13 = vpop.f32.mrf.mxu3 }
 0xfea   :  { %v1873_v39 = vadd.f32 %v2219_v37, %v1872_v13 }
 0xfec   :  { %1898 = vmatpush.msra.mxu1 %v1873_v39 }
 0xfee   :  { %1899 = vmatpush.msra.mxu1 %v1870_v40 }
 0xfef   :  { %2138 = vmatmul.msk.f32.vlgmr.msra.gmra.mxu1 %vm228_vm10, %v2137_v42 }
0x106c   :  { %v1901_v15 = vpop.f32.mrf.mxu1 }
0x106d   :  { %2139 = vmatmul.msk.f32.vlgmr.msrb.gmra.mxu2 %vm76_vm2, %v1901_v15 }
0x10f0   :  { %v1930_v45 = vpop.f32.mrf.mxu2 }
0x10f1   :  { %v1931_v46 = vadd.f32 %v2220_v20, %v1930_v45 }
0x10f3   :  { %v1934_v47 = vmul.f32 0.70710677, %v1931_v46  ;;  %v1933_v9 = vmul.f32 0.5, %v1931_v46 }
0x10f5   :  { %v1937_v49 = vand.u32 2147483647, %v1934_v47  ;;  %vm1935_vm3 = vcmp.lt.f32.partialorder %v1934_v47, 0.0 }
0x10f6   :  { %v1936_v8 = vsel %vm1935_vm3, -1.0, %v2362_v22 }
0x10f7   :  { %v1938_v50 = vmul.f32 0.3275911, %v1937_v49  ;;  %v1964_v2 = vsub.f32 0.0, %v1937_v49 }
0x10f9   :  { %v1939_v51 = vadd.f32 1.0, %v1938_v50  ;;  %v1965_v1 = vmul.f32 %v1964_v2, %v1937_v49 }
0x10fb   :  { %2313 = vrcp.f32 %v1939_v51  ;;  %v1951_v55 = vand.u32 2147483648, %v1939_v51  ;;  %v1949_v58 = vand.u32 2147483647, %v1939_v51  ;;  %vm1945_vm15 = vweird.f32 %v1939_v51 }
0x10fc   :  { %v1966_v62 = vmul.f32 1.442695, %v1965_v1 }
0x10fd   :  { %v1952_v61 = vor.u32 1.1754944e-38, %v1951_v55  ;;  %vm1950_vm1 = vcmp.eq.f32.partialorder %v1949_v58, 8.507059e+37 }
0x10fe   :  { %2315 = vpow2.f32 %v1966_v62 }
0x1101   :  { %v2314_v52 = vpop.eup %2313 }
0x1102   :  { %v1941_v53 = vmul.f32 %v2314_v52, %v1939_v51  ;;  %vm1946_vm10 = vweird.f32 %v2314_v52 }
0x1103   :  { %vm1947_vm0 = vmor %vm1945_vm15, %vm1946_vm10 }
0x1104   :  { %v1942_v54 = vsub.f32 1.0, %v1941_v53  ;;  %v2316_v44 = vpop.eup %2315 }
0x1106   :  { %v1943_v56 = vmul.f32 %v2314_v52, %v1942_v54 }
0x1108   :  { %v1944_v59 = vadd.f32 %v2314_v52, %v1943_v56 }
0x110a   :  { %v1948_v63 = vsel %vm1947_vm0, %v2314_v52, %v1944_v59 }
0x110b   :  { %v1953_v0 = vsel %vm1950_vm1, %v1952_v61, %v1948_v63 }
0x110c   :  { %v1955_v3 = vmul.f32 1.0614054, %v1953_v0 }
0x110e   :  { %v1956_v29 = vadd.f32 -1.4531521, %v1955_v3 }
0x1110   :  { %v1957_v16 = vmul.f32 %v1956_v29, %v1953_v0 }
0x1112   :  { %v1958_v24 = vadd.f32 1.4214138, %v1957_v16 }
0x1114   :  { %v1959_v34 = vmul.f32 %v1958_v24, %v1953_v0 }
0x1116   :  { %v1960_v7 = vadd.f32 -0.28449672, %v1959_v34 }
0x1118   :  { %v1961_v38 = vmul.f32 %v1960_v7, %v1953_v0 }
0x111a   :  { %v1962_v4 = vadd.f32 0.2548296, %v1961_v38 }
0x111c   :  { %v1963_v10 = vmul.f32 %v1962_v4, %v1953_v0 }
0x111e   :  { %v1968_v48 = vmul.f32 %v2316_v44, %v1963_v10 }
0x1120   :  { %v1969_v11 = vsub.f32 1.0, %v1968_v48 }
0x1122   :  { %v1970_v60 = vmul.f32 %v1969_v11, %v1936_v8 }
0x1124   :  { %v1971_v17 = vadd.f32 1.0, %v1970_v60 }
0x1126   :  { %v1972_v57 = vmul.f32 %v1971_v17, %v1933_v9 }
0x1128   :  { %2156 = vmatmul.msk.f32.vlgmr.msrb.gmra.mxu0 %vm76_vm2, %v1972_v57 }
0x11a5   :  { %v2041_v12 = vpop.f32.mrf.mxu0 }
0x11a6   :  { %2044 = vst [vmem:[#allocation2] sm:$0xff] %v2041_v12 }
0x11a7   :  { %2055 = dma.vmem_to_hbm [thread:$0]  %s2051_s30, 128, %s2053_s7, [#allocation3]  }
0x11a8   :  { %2359 = dma.done.wait [#allocation3], 128  }
0x11a9   :  { %2360 = vsyncadd [#allocation3], 4294967168 }
0x11aa   :  { %2060 = vsyncpa [#allocation3], 1 }

</bundles_post_ra>
